<compile_context>
chip_gen: v6e
topology: v6e:2x2x1
jax: 0.10.0
libtpu: 0.0.40
codegen_flags: <defaults>
</compile_context>

<pallas_src>
import jax
import jax.numpy as jnp
from jax.experimental import pallas as pl
from jax.experimental.pallas import tpu as pltpu

# ---------------- configuration (small, consistent with the module) ---------
N_ROWS = 4                     # table rows (n_noise_samples analogue)
N_COLS = 8                     # numbers per row
IMG_H = 32                     # small stand-in for image_size=(224, 224)
IMG_W = 32
PATCH = 8
DISTINCT = IMG_W // PATCH      # distinct patches per table row (image rows identical) = 4
NUM_PATCHES = (IMG_H // PATCH) * (IMG_W // PATCH)   # 16 (reference path only)
FEAT = PATCH * PATCH * 3       # 192 (reference path only; folded away in the kernel)
HIDDEN = 256
EMBED = 2048                   # ResNet101 avg-pool width

IMAGENET_MEAN = jnp.array([0.485, 0.456, 0.406], dtype=jnp.float32)
IMAGENET_STD = jnp.array([0.229, 0.224, 0.225], dtype=jnp.float32)


def _int16_wrap(v):
    """row.astype(np.int16) semantics on an int32 array (wraps for |v| >= 32768)."""
    v = jnp.bitwise_and(v.astype(jnp.int32), 0xFFFF)
    return jnp.where(v >= 32768, v - 65536, v)


# ---------------- Pallas kernel ---------------------------------------------
def table_embed_kernel(matrix_ref, w1e_ref, b1_ref, w2_ref, b2_ref, out_ref):
    # matrix_ref: (N_ROWS, N_COLS) int32 -- rasterization is fused in-kernel.
    v = _int16_wrap(matrix_ref[...])
    intensity = (jnp.tanh(v.astype(jnp.float32) * (1.0 / 255.0)) + 1.0) * 0.5

    # Rasterization + Normalize + layer 1, all pre-folded into w1e of shape
    # (N_COLS, DISTINCT*HIDDEN).  K = 8, M = 4, so 8 rank-1 VPU accumulations
    # beat spinning up an MXU pass; the MXU is kept for the 256x2048 matmul.
    w1e = w1e_ref[...]
    h = b1_ref[...] + intensity[:, 0:1] * w1e[0:1, :]
    for j in range(1, N_COLS):
        h = h + intensity[:, j:j + 1] * w1e[j:j + 1, :]
    h = jnp.maximum(h, 0.0)                              # (N_ROWS, DISTINCT*HIDDEN)

    # Global average pool per table row: the DISTINCT patch columns live in
    # lane-aligned HIDDEN-wide slices; vertically duplicated patches have
    # identical activations, so summing the distinct ones and dividing by
    # DISTINCT is exact.
    r = h[:, :HIDDEN]
    for p in range(1, DISTINCT):
        r = r + h[:, p * HIDDEN:(p + 1) * HIDDEN]
    r = r * (1.0 / DISTINCT)                             # (N_ROWS, HIDDEN)

    # The only matmul with real bytes: bf16 operands, f32 accumulation on the
    # MXU, one lane-dense (N_ROWS, EMBED) store.
    out_ref[...] = jnp.dot(r.astype(jnp.bfloat16), w2_ref[...],
                           preferred_element_type=jnp.float32) + b2_ref[...]


# ---------------- one-time parameter preparation (hoisted out of forward) ---
def prepare_params(params):
    """Fold Normalize + stripe rasterization + patch extraction into layer 1
    and cast W2 to bf16.  Call ONCE; results are reused by every forward."""
    w1, b1, w2, b2 = params

    # Fold transforms.Normalize into layer 1 (exact, done in f32).
    mean_f = jnp.tile(IMAGENET_MEAN, PATCH * PATCH)            # (FEAT,), channel fastest
    inv_std_f = jnp.tile(1.0 / IMAGENET_STD, PATCH * PATCH)
    w1n = inv_std_f[:, None] * w1                              # (FEAT, HIDDEN)
    b1n = b1 - (mean_f * inv_std_f)[None, :] @ w1              # (1, HIDDEN)

    # render[j, pc, f] = 1 where feature f of distinct patch-column pc reads
    # table column j of the stripe image (every image row is identical, so
    # only IMG_W // PATCH patches per table row are distinct).
    f = jnp.arange(FEAT)
    px = (f // 3) % PATCH                                      # feature order (py, px, c)
    img_col = jnp.arange(DISTINCT)[:, None] * PATCH + px[None, :]
    tab_col = jnp.minimum((img_col * N_COLS) // IMG_W, N_COLS - 1)
    render = (tab_col[None, :, :]
              == jnp.arange(N_COLS)[:, None, None]).astype(jnp.float32)

    w1_eff = jnp.einsum('jpf,fh->jph', render, w1n)            # (N_COLS, DISTINCT, HIDDEN)
    w1_eff = w1_eff.reshape(N_COLS, DISTINCT * HIDDEN)
    b1_eff = jnp.tile(b1n, (1, DISTINCT))                      # (1, DISTINCT*HIDDEN)

    return (w1_eff, b1_eff, w2.astype(jnp.bfloat16), b2)


# ---------------- forward ----------------------------------------------------
def numerical_table_embeddings(matrix, prepped):
    """matrix: (N_ROWS, N_COLS) ints -> (N_ROWS, 1, 2048) float32."""
    w1_eff, b1_eff, w2_bf, b2 = prepped
    vmem = pl.BlockSpec(memory_space=pltpu.MemorySpace.VMEM)
    out = pl.pallas_call(
        table_embed_kernel,
        out_shape=jax.ShapeDtypeStruct((N_ROWS, EMBED), jnp.float32),
        in_specs=[vmem] * 5,
        out_specs=vmem,
    )(matrix.astype(jnp.int32), w1_eff, b1_eff, w2_bf, b2)
    # Match the module's (n_rows, 1, 2048) output contract (metadata-only).
    return out.reshape(N_ROWS, 1, EMBED)


# ---------------- deterministic parameter init ------------------------------
def init_params(key):
    k1, k2 = jax.random.split(key)
    w1 = jax.random.normal(k1, (FEAT, HIDDEN), jnp.float32) / jnp.sqrt(FEAT)
    b1 = jnp.zeros((1, HIDDEN), jnp.float32)
    w2 = jax.random.normal(k2, (HIDDEN, EMBED), jnp.float32) / jnp.sqrt(HIDDEN)
    b2 = jnp.zeros((1, EMBED), jnp.float32)
    return (w1, b1, w2, b2)


# ---------------- pure-JAX reference: the UNFUSED path -----------------------
def reference(matrix, params):
    """Full image render, all 64 patches, explicit Normalize, f32 layer-1/GAP.
    Validates the kernel's folds; only the final W2 matmul is bf16 to match
    the kernel's precision choice."""
    w1, b1, w2, b2 = params
    vals = _int16_wrap(matrix).astype(jnp.float32)
    intensity = (jnp.tanh(vals * (1.0 / 255.0)) + 1.0) * 0.5   # (R, C)
    col_idx = jnp.minimum((jnp.arange(IMG_W) * N_COLS) // IMG_W, N_COLS - 1)
    stripes = intensity[:, col_idx]                            # (R, W)
    images = jnp.broadcast_to(stripes[:, None, :, None],
                              (N_ROWS, IMG_H, IMG_W, 3))       # NHWC
    x = (images - IMAGENET_MEAN) / IMAGENET_STD                # transforms.Normalize
    patches = x.reshape(N_ROWS, IMG_H // PATCH, PATCH, IMG_W // PATCH, PATCH, 3)
    patches = patches.transpose(0, 1, 3, 2, 4, 5).reshape(N_ROWS, NUM_PATCHES, FEAT)
    h = jnp.maximum(jnp.einsum('rpf,fh->rph', patches, w1) + b1, 0.0)
    r = jnp.mean(h, axis=1)                                    # GAP over all patches
    out = jnp.dot(r.astype(jnp.bfloat16), w2.astype(jnp.bfloat16),
                  preferred_element_type=jnp.float32) + b2
    return out.reshape(N_ROWS, 1, EMBED)


if __name__ == "__main__":
    key = jax.random.PRNGKey(0)
    k_data, k_params = jax.random.split(key)
    # Synthetic numeric table (the "matrix" argument of forward()).
    matrix = jax.random.randint(k_data, (N_ROWS, N_COLS), -500, 500, jnp.int32)
    params = init_params(k_params)

    prepped = prepare_params(params)           # one-time weight prep (hoisted)
    forward = jax.jit(numerical_table_embeddings)

    out = jax.block_until_ready(forward(matrix, prepped))
    assert out.shape == (N_ROWS, 1, EMBED), out.shape
    assert out.dtype == jnp.float32, out.dtype

    ref = jax.block_until_ready(reference(matrix, params))
    assert jnp.allclose(out, ref, atol=2e-2, rtol=2e-2), \
        float(jnp.max(jnp.abs(out - ref)))

    print("KERNEL_OK")
</pallas_src>

<mosaic_0001>
module attributes {stable_mosaic.version = 11 : i64} {
  func.func @table_embed_kernel(%arg0: memref<4x8xi32, #tpu.memory_space<vmem>>, %arg1: memref<8x1024xf32, #tpu.memory_space<vmem>>, %arg2: memref<1x1024xf32, #tpu.memory_space<vmem>>, %arg3: memref<256x2048xbf16, #tpu.memory_space<vmem>>, %arg4: memref<1x2048xf32, #tpu.memory_space<vmem>>, %arg5: memref<4x2048xf32, #tpu.memory_space<vmem>>) attributes {dimension_semantics = [], scalar_prefetch = 0 : i64, scratch_operands = 0 : i64, tpu.core_type = #tpu.core_type<tc>} {
    %c0 = arith.constant 0 : index
    %c0_0 = arith.constant 0 : index
    %0 = vector.load %arg0[%c0, %c0_0] : memref<4x8xi32, #tpu.memory_space<vmem>>, vector<4x8xi32>
    %c65535_i32 = arith.constant 65535 : i32
    %1 = vector.broadcast %c65535_i32 : i32 to vector<4x8xi32>
    %2 = arith.andi %0, %1 : vector<4x8xi32>
    %c32768_i32 = arith.constant 32768 : i32
    %3 = vector.broadcast %c32768_i32 : i32 to vector<4x8xi32>
    %4 = arith.cmpi sge, %2, %3 : vector<4x8xi32>
    %c65536_i32 = arith.constant 65536 : i32
    %5 = vector.broadcast %c65536_i32 : i32 to vector<4x8xi32>
    %6 = arith.subi %2, %5 : vector<4x8xi32>
    %7 = arith.select %4, %6, %2 : vector<4x8xi1>, vector<4x8xi32>
    %8 = arith.sitofp %7 : vector<4x8xi32> to vector<4x8xf32>
    %cst = arith.constant 0.00392156886 : f32
    %9 = vector.broadcast %cst : f32 to vector<4x8xf32>
    %10 = arith.mulf %8, %9 : vector<4x8xf32>
    %11 = math.tanh %10 : vector<4x8xf32>
    %cst_1 = arith.constant 1.000000e+00 : f32
    %12 = vector.broadcast %cst_1 : f32 to vector<4x8xf32>
    %13 = arith.addf %11, %12 : vector<4x8xf32>
    %cst_2 = arith.constant 5.000000e-01 : f32
    %14 = vector.broadcast %cst_2 : f32 to vector<4x8xf32>
    %15 = arith.mulf %13, %14 : vector<4x8xf32>
    %c0_3 = arith.constant 0 : index
    %c0_4 = arith.constant 0 : index
    %16 = vector.load %arg1[%c0_3, %c0_4] : memref<8x1024xf32, #tpu.memory_space<vmem>>, vector<8x1024xf32>
    %c0_5 = arith.constant 0 : index
    %c0_6 = arith.constant 0 : index
    %17 = vector.load %arg2[%c0_5, %c0_6] : memref<1x1024xf32, #tpu.memory_space<vmem>>, vector<1x1024xf32>
    %18 = vector.extract_strided_slice %15 {offsets = [0, 0], sizes = [4, 1], strides = [1, 1]} : vector<4x8xf32> to vector<4x1xf32>
    %19 = vector.extract_strided_slice %16 {offsets = [0, 0], sizes = [1, 1024], strides = [1, 1]} : vector<8x1024xf32> to vector<1x1024xf32>
    %20 = vector.broadcast %18 : vector<4x1xf32> to vector<4x1024xf32>
    %21 = vector.broadcast %19 : vector<1x1024xf32> to vector<4x1024xf32>
    %22 = arith.mulf %20, %21 : vector<4x1024xf32>
    %23 = vector.broadcast %17 : vector<1x1024xf32> to vector<4x1024xf32>
    %24 = arith.addf %23, %22 : vector<4x1024xf32>
    %25 = vector.extract_strided_slice %15 {offsets = [0, 1], sizes = [4, 1], strides = [1, 1]} : vector<4x8xf32> to vector<4x1xf32>
    %26 = vector.extract_strided_slice %16 {offsets = [1, 0], sizes = [1, 1024], strides = [1, 1]} : vector<8x1024xf32> to vector<1x1024xf32>
    %27 = vector.broadcast %25 : vector<4x1xf32> to vector<4x1024xf32>
    %28 = vector.broadcast %26 : vector<1x1024xf32> to vector<4x1024xf32>
    %29 = arith.mulf %27, %28 : vector<4x1024xf32>
    %30 = arith.addf %24, %29 : vector<4x1024xf32>
    %31 = vector.extract_strided_slice %15 {offsets = [0, 2], sizes = [4, 1], strides = [1, 1]} : vector<4x8xf32> to vector<4x1xf32>
    %32 = vector.extract_strided_slice %16 {offsets = [2, 0], sizes = [1, 1024], strides = [1, 1]} : vector<8x1024xf32> to vector<1x1024xf32>
    %33 = vector.broadcast %31 : vector<4x1xf32> to vector<4x1024xf32>
    %34 = vector.broadcast %32 : vector<1x1024xf32> to vector<4x1024xf32>
    %35 = arith.mulf %33, %34 : vector<4x1024xf32>
    %36 = arith.addf %30, %35 : vector<4x1024xf32>
    %37 = vector.extract_strided_slice %15 {offsets = [0, 3], sizes = [4, 1], strides = [1, 1]} : vector<4x8xf32> to vector<4x1xf32>
    %38 = vector.extract_strided_slice %16 {offsets = [3, 0], sizes = [1, 1024], strides = [1, 1]} : vector<8x1024xf32> to vector<1x1024xf32>
    %39 = vector.broadcast %37 : vector<4x1xf32> to vector<4x1024xf32>
    %40 = vector.broadcast %38 : vector<1x1024xf32> to vector<4x1024xf32>
    %41 = arith.mulf %39, %40 : vector<4x1024xf32>
    %42 = arith.addf %36, %41 : vector<4x1024xf32>
    %43 = vector.extract_strided_slice %15 {offsets = [0, 4], sizes = [4, 1], strides = [1, 1]} : vector<4x8xf32> to vector<4x1xf32>
    %44 = vector.extract_strided_slice %16 {offsets = [4, 0], sizes = [1, 1024], strides = [1, 1]} : vector<8x1024xf32> to vector<1x1024xf32>
    %45 = vector.broadcast %43 : vector<4x1xf32> to vector<4x1024xf32>
    %46 = vector.broadcast %44 : vector<1x1024xf32> to vector<4x1024xf32>
    %47 = arith.mulf %45, %46 : vector<4x1024xf32>
    %48 = arith.addf %42, %47 : vector<4x1024xf32>
    %49 = vector.extract_strided_slice %15 {offsets = [0, 5], sizes = [4, 1], strides = [1, 1]} : vector<4x8xf32> to vector<4x1xf32>
    %50 = vector.extract_strided_slice %16 {offsets = [5, 0], sizes = [1, 1024], strides = [1, 1]} : vector<8x1024xf32> to vector<1x1024xf32>
    %51 = vector.broadcast %49 : vector<4x1xf32> to vector<4x1024xf32>
    %52 = vector.broadcast %50 : vector<1x1024xf32> to vector<4x1024xf32>
    %53 = arith.mulf %51, %52 : vector<4x1024xf32>
    %54 = arith.addf %48, %53 : vector<4x1024xf32>
    %55 = vector.extract_strided_slice %15 {offsets = [0, 6], sizes = [4, 1], strides = [1, 1]} : vector<4x8xf32> to vector<4x1xf32>
    %56 = vector.extract_strided_slice %16 {offsets = [6, 0], sizes = [1, 1024], strides = [1, 1]} : vector<8x1024xf32> to vector<1x1024xf32>
    %57 = vector.broadcast %55 : vector<4x1xf32> to vector<4x1024xf32>
    %58 = vector.broadcast %56 : vector<1x1024xf32> to vector<4x1024xf32>
    %59 = arith.mulf %57, %58 : vector<4x1024xf32>
    %60 = arith.addf %54, %59 : vector<4x1024xf32>
    %61 = vector.extract_strided_slice %15 {offsets = [0, 7], sizes = [4, 1], strides = [1, 1]} : vector<4x8xf32> to vector<4x1xf32>
    %62 = vector.extract_strided_slice %16 {offsets = [7, 0], sizes = [1, 1024], strides = [1, 1]} : vector<8x1024xf32> to vector<1x1024xf32>
    %63 = vector.broadcast %61 : vector<4x1xf32> to vector<4x1024xf32>
    %64 = vector.broadcast %62 : vector<1x1024xf32> to vector<4x1024xf32>
    %65 = arith.mulf %63, %64 : vector<4x1024xf32>
    %66 = arith.addf %60, %65 : vector<4x1024xf32>
    %cst_7 = arith.constant 0.000000e+00 : f32
    %67 = vector.broadcast %cst_7 : f32 to vector<4x1024xf32>
    %68 = arith.maximumf %66, %67 : vector<4x1024xf32>
    %69 = vector.extract_strided_slice %68 {offsets = [0, 0], sizes = [4, 256], strides = [1, 1]} : vector<4x1024xf32> to vector<4x256xf32>
    %70 = vector.extract_strided_slice %68 {offsets = [0, 256], sizes = [4, 256], strides = [1, 1]} : vector<4x1024xf32> to vector<4x256xf32>
    %71 = arith.addf %69, %70 : vector<4x256xf32>
    %72 = vector.extract_strided_slice %68 {offsets = [0, 512], sizes = [4, 256], strides = [1, 1]} : vector<4x1024xf32> to vector<4x256xf32>
    %73 = arith.addf %71, %72 : vector<4x256xf32>
    %74 = vector.extract_strided_slice %68 {offsets = [0, 768], sizes = [4, 256], strides = [1, 1]} : vector<4x1024xf32> to vector<4x256xf32>
    %75 = arith.addf %73, %74 : vector<4x256xf32>
    %cst_8 = arith.constant 2.500000e-01 : f32
    %76 = vector.broadcast %cst_8 : f32 to vector<4x256xf32>
    %77 = arith.mulf %75, %76 : vector<4x256xf32>
    %78 = arith.truncf %77 : vector<4x256xf32> to vector<4x256xbf16>
    %c0_9 = arith.constant 0 : index
    %c0_10 = arith.constant 0 : index
    %79 = vector.load %arg3[%c0_9, %c0_10] : memref<256x2048xbf16, #tpu.memory_space<vmem>>, vector<256x2048xbf16>
    %cst_11 = arith.constant dense<0.000000e+00> : vector<4x2048xf32>
    %80 = tpu.matmul %78, %79, %cst_11 {dimension_numbers = #tpu.dot_dimension_numbers<[1], [0], [0], [1], [0, 0, 1, 1], [], []>} : vector<4x256xbf16>, vector<256x2048xbf16>, vector<4x2048xf32> -> vector<4x2048xf32>
    %c0_12 = arith.constant 0 : index
    %c0_13 = arith.constant 0 : index
    %81 = vector.load %arg4[%c0_12, %c0_13] : memref<1x2048xf32, #tpu.memory_space<vmem>>, vector<1x2048xf32>
    %82 = vector.broadcast %81 : vector<1x2048xf32> to vector<4x2048xf32>
    %83 = arith.addf %80, %82 : vector<4x2048xf32>
    %c0_14 = arith.constant 0 : index
    %c0_15 = arith.constant 0 : index
    %84 = vector.load %arg5[%c0_14, %c0_15] : memref<4x2048xf32, #tpu.memory_space<vmem>>, vector<4x2048xf32>
    tpu.vector_store %arg5[%c0_14, %c0_15], %83 {strides = array<i32>} : memref<4x2048xf32, #tpu.memory_space<vmem>>, vector<4x2048xf32>,
    return
  }
}

</mosaic_0001>

<bundles_post_ra>
// kernel: numerical_table_embeddings.1
= control target key start
LH: loop header
LB: loop body
LE: loop exit
PB: predicated region body
PF: predicated region fallthrough
CT: control target
= control target key end

     0   :  { %10 = vsyncpa [#allocation3], 0  ;;  %s3505_s0 = inlined_call_operand.hbm [shape: s32[4,8], index: 0, kind: input, shape index: {}]   ;;  %s3506_s1 = inlined_call_operand.hbm [shape: f32[8,1024], index: 1, kind: input, shape index: {}]   ;;  %s3507_s2 = inlined_call_operand.hbm [shape: f32[1,1024], index: 2, kind: input, shape index: {}]   ;;  %s3508_s3 = inlined_call_operand.hbm [shape: bf16[256,2048], index: 3, kind: input, shape index: {}]   ;;  %s3509_s4 = inlined_call_operand.hbm [shape: f32[1,2048], index: 4, kind: input, shape index: {}]   ;;  %s3510_s5 = inlined_call_operand.vmem [shape: f32[4,2048], index: 5, kind: output, shape index: {}]  }
   0x1   :  { %11 = vsyncpa [#allocation5], 0 }
   0x2   :  { %12 = vsyncpa [#allocation8], 0  ;;  %s2959_s18 = smov [#allocation4]   ;;  %s2960_s20 = smov [#allocation7]  }
   0x3   :  { %s29_s19 = sshll.u32 %s2959_s18, 4  ;;  %s48_s21 = sshll.u32 %s2960_s20, 4  ;;  %s30_s19 = int_to_ptr.vmem [resolvable:$true] %s29_s19  ;;  %s49_s21 = int_to_ptr.vmem [resolvable:$true] %s48_s21 }
   0x4   :  { %s2861_s22 = scalar_lea.vmem %s30_s19, 1024  ;;  %p2866_p1 = scmp.lt.s32.totalorder %s30_s19, %s30_s19 }
   0x5   :  { %p2862_p0 = scmp.ne.s32.totalorder %s30_s19, %s2861_s22  ;;  %p2867_p2 = scmp.lt.s32.totalorder %s2861_s22, %s2861_s22 }
   0x7   :  { %p2868_p3 = por %p2867_p2, %p2866_p1 }
   0x9   :  { %p2869_p4 = pnand %p2868_p3, %p2862_p0 }
   0xb   :  { %2872 = shalt.err (!%p2869_p4)
}
   0xc   :  { %32 = dma.hbm_to_vmem [thread:$0]  %s3506_s1, 1024, %s30_s19, [#allocation5]  }
   0xd   :  { %s2881_s25 = scalar_lea.vmem %s49_s21, 32768  ;;  %p2886_p6 = scmp.lt.s32.totalorder %s49_s21, %s49_s21 }
   0xe   :  { %p2882_p5 = scmp.ne.s32.totalorder %s49_s21, %s2881_s25  ;;  %p2887_p7 = scmp.lt.s32.totalorder %s2881_s25, %s2881_s25 }
  0x10   :  { %p2888_p8 = por %p2887_p7, %p2886_p6 }
  0x12   :  { %p2889_p9 = pnand %p2888_p8, %p2882_p5 }
  0x14   :  { %2892 = shalt.err (!%p2889_p9)
}
  0x15   :  { %s2961_s26 = smov 1024   ;;  %s2962_s27 = smov 64  }
  0x16   :  { %54 = dma.hbm_to_vmem [thread:$0]  %s3508_s3, 32768, %s49_s21, [#allocation8], %s2961_s26, %s2961_s26, %s2962_s27  }
  0x17   :  { %s2963_s30 = smov [#allocation2]   ;;  %s2964_s7 = smov [#allocation6]  }
  0x18   :  { %s19_s6 = sshll.u32 %s2963_s30, 4  ;;  %s39_s8 = sshll.u32 %s2964_s7, 4  ;;  %s20_s6 = int_to_ptr.vmem [resolvable:$true] %s19_s6  ;;  %s40_s8 = int_to_ptr.vmem [resolvable:$true] %s39_s8 }
  0x19   :  { %s2901_s1 = scalar_lea.vmem %s20_s6, 64  ;;  %p2906_p11 = scmp.lt.s32.totalorder %s20_s6, %s20_s6 }
  0x1a   :  { %p2902_p10 = scmp.ne.s32.totalorder %s20_s6, %s2901_s1  ;;  %p2907_p12 = scmp.lt.s32.totalorder %s2901_s1, %s2901_s1 }
  0x1c   :  { %p2908_p13 = por %p2907_p12, %p2906_p11 }
  0x1e   :  { %p2909_p0 = pnand %p2908_p13, %p2902_p10 }
  0x20   :  { %2912 = shalt.err (!%p2909_p0)
}
  0x21   :  { %22 = dma.hbm_to_vmem [thread:$0]  %s3505_s0, 64, %s20_s6, [#allocation3]  }
  0x22   :  { %s2921_s11 = scalar_lea.vmem %s40_s8, 128  ;;  %p2926_p2 = scmp.lt.s32.totalorder %s40_s8, %s40_s8 }
  0x23   :  { %p2922_p1 = scmp.ne.s32.totalorder %s40_s8, %s2921_s11  ;;  %p2927_p3 = scmp.lt.s32.totalorder %s2921_s11, %s2921_s11 }
  0x25   :  { %p2928_p4 = por %p2927_p3, %p2926_p2 }
  0x27   :  { %p2929_p5 = pnand %p2928_p4, %p2922_p1 }
  0x29   :  { %2932 = shalt.err (!%p2929_p5)
}
  0x2a   :  { %42 = dma.hbm_to_vmem [thread:$0]  %s3507_s2, 128, %s40_s8, [#allocation5]  }
  0x2b   :  { %s2965_s13 = smov [#allocation9]  }
  0x2c   :  { %s61_s14 = sshll.u32 %s2965_s13, 4  ;;  %s62_s14 = int_to_ptr.vmem [resolvable:$true] %s61_s14 }
  0x2d   :  { %s2941_s15 = scalar_lea.vmem %s62_s14, 256  ;;  %p2946_p7 = scmp.lt.s32.totalorder %s62_s14, %s62_s14 }
  0x2e   :  { %p2942_p6 = scmp.ne.s32.totalorder %s62_s14, %s2941_s15  ;;  %p2947_p8 = scmp.lt.s32.totalorder %s2941_s15, %s2941_s15 }
  0x30   :  { %p2948_p9 = por %p2947_p8, %p2946_p7 }
  0x32   :  { %p2949_p10 = pnand %p2948_p9, %p2942_p6 }
  0x34   :  { %2952 = shalt.err (!%p2949_p10)
}
  0x35   :  { %64 = dma.hbm_to_vmem [thread:$0]  %s3509_s4, 256, %s62_s14, [#allocation8]  }
  0x36   :  { %2953 = dma.done.wait [#allocation3], 64  }
  0x37   :  { %2954 = vsyncadd [#allocation3], 4294967232 }
  0x38   :  { %2955 = dma.done.wait [#allocation5], 1152  }
  0x39   :  { %2956 = vsyncadd [#allocation5], 4294966144 }
  0x3a   :  { %2957 = dma.done.wait [#allocation8], 33024  }
  0x3b   :  { %2958 = vsyncadd [#allocation8], 4294934272  ;;  %v2966_v0 = vmov 2   ;;  %v2967_v1 = vmov 0   ;;  %v80_v2 = vld [vmem:[#allocation2] sm:$0xf] }
  0x3c   :  { %2844 = vset.pattern.permute.xlu1 %v2966_v0  ;;  %2842 = vset.pattern.permute.xlu0 %v2967_v1  ;;  %v687_v3 = vld [vmem:[#allocation7 + $0x380] sm:$0xff]  ;;  %v81_v5 = vand.u32 65535, %v80_v2  ;;  %v688_v7 = vld [vmem:[#allocation7 + $0x388] sm:$0xff] }
  0x3d   :  { %v695_v4 = vld [vmem:[#allocation7 + $0x3c0] sm:$0xff]  ;;  %v696_v8 = vld [vmem:[#allocation7 + $0x3c8] sm:$0xff] }
  0x3e   :  { %v2684_v6 = vcombine.high %v687_v3, %v695_v4  ;;  %v2683_v9 = vcombine.low %v687_v3, %v695_v4  ;;  %v671_v10 = vld [vmem:[#allocation7 + $0x300] sm:$0xff]  ;;  %v2686_v11 = vcombine.high %v688_v7, %v696_v8  ;;  %v2685_v12 = vcombine.low %v688_v7, %v696_v8  ;;  %v672_v14 = vld [vmem:[#allocation7 + $0x308] sm:$0xff] }
  0x3f   :  { %v679_v13 = vld [vmem:[#allocation7 + $0x340] sm:$0xff]  ;;  %v680_v15 = vld [vmem:[#allocation7 + $0x348] sm:$0xff]  ;;  %vm82_vm0 = vcmp.ge.s32.totalorder %v81_v5, 32768  ;;  %v2570_v16 = vadd.s32 4294901760, %v81_v5 }
  0x40   :  { %2195 = vmatprep.subr.bf16.mxu0 %v2684_v6  ;;  %v2668_v17 = vcombine.high %v671_v10, %v679_v13  ;;  %v2670_v18 = vcombine.high %v672_v14, %v680_v15  ;;  %v655_v19 = vld [vmem:[#allocation7 + $0x280] sm:$0xff]  ;;  %v656_v21 = vld [vmem:[#allocation7 + $0x288] sm:$0xff]  ;;  %2236 = vmatprep.subr.bf16.mxu1 %v2686_v11  ;;  %v2667_v22 = vcombine.low %v671_v10, %v679_v13 }
  0x41   :  { %v663_v20 = vld [vmem:[#allocation7 + $0x2c0] sm:$0xff]  ;;  %2196 = vmatpush1.bf16.msra.mxu0 %v2683_v9  ;;  %v664_v23 = vld [vmem:[#allocation7 + $0x2c8] sm:$0xff]  ;;  %v84_v24 = vsel %vm82_vm0, %v2570_v16, %v81_v5  ;;  %2237 = vmatpush1.bf16.msra.mxu1 %v2685_v12  ;;  %v2669_v25 = vcombine.low %v672_v14, %v680_v15 }
  0x42   :  { %2197 = vmatprep.subr.bf16.mxu0 %v2668_v17  ;;  %v2652_v26 = vcombine.high %v655_v19, %v663_v20  ;;  %v85_v27 = vcvt.s32.f32 %v84_v24  ;;  %2238 = vmatprep.subr.bf16.mxu1 %v2670_v18  ;;  %v2654_v28 = vcombine.high %v656_v21, %v664_v23  ;;  %v639_v29 = vld [vmem:[#allocation7 + $0x200] sm:$0xff]  ;;  %v640_v31 = vld [vmem:[#allocation7 + $0x208] sm:$0xff]  ;;  %v2651_v34 = vcombine.low %v655_v19, %v663_v20 }
  0x43   :  { %v647_v30 = vld [vmem:[#allocation7 + $0x240] sm:$0xff]  ;;  %v648_v32 = vld [vmem:[#allocation7 + $0x248] sm:$0xff]  ;;  %v2653_v35 = vcombine.low %v656_v21, %v664_v23  ;;  %v2968_v17 = vmov 3   ;;  %v2969_v18 = vmov 1   ;;  %v2970_v24 = vmov 4  }
  0x44   :  { %v86_v33 = vmul.f32 0.003921569, %v85_v27  ;;  %v2636_v36 = vcombine.high %v639_v29, %v647_v30  ;;  %v2638_v37 = vcombine.high %v640_v31, %v648_v32  ;;  %v623_v38 = vld [vmem:[#allocation7 + $0x180] sm:$0xff]  ;;  %v624_v40 = vld [vmem:[#allocation7 + $0x188] sm:$0xff]  ;;  %v2635_v42 = vcombine.low %v639_v29, %v647_v30 }
  0x45   :  { %2198 = vmatpush1.bf16.msra.mxu0 %v2667_v22  ;;  %2239 = vmatpush1.bf16.msra.mxu1 %v2669_v25  ;;  %v631_v39 = vld [vmem:[#allocation7 + $0x1c0] sm:$0xff]  ;;  %v632_v41 = vld [vmem:[#allocation7 + $0x1c8] sm:$0xff]  ;;  %v2637_v43 = vcombine.low %v640_v31, %v648_v32  ;;  %v2971_v25 = vmov 5  }
  0x46   :  { %2199 = vmatprep.subr.bf16.mxu0 %v2652_v26  ;;  %2851 = vtanh.f32 %v86_v33  ;;  %2240 = vmatprep.subr.bf16.mxu1 %v2654_v28  ;;  %v2620_v44 = vcombine.high %v623_v38, %v631_v39  ;;  %v2622_v45 = vcombine.high %v624_v40, %v632_v41  ;;  %v607_v46 = vld [vmem:[#allocation7 + $0x100] sm:$0xff]  ;;  %v608_v48 = vld [vmem:[#allocation7 + $0x108] sm:$0xff]  ;;  %v2619_v50 = vcombine.low %v623_v38, %v631_v39 }
  0x47   :  { %v615_v47 = vld [vmem:[#allocation7 + $0x140] sm:$0xff]  ;;  %v616_v49 = vld [vmem:[#allocation7 + $0x148] sm:$0xff]  ;;  %v2621_v51 = vcombine.low %v624_v40, %v632_v41  ;;  %v2973_v40 = vmov 7  }
  0x48   :  { %v2604_v52 = vcombine.high %v607_v46, %v615_v47  ;;  %v2606_v53 = vcombine.high %v608_v48, %v616_v49  ;;  %v591_v54 = vld [vmem:[#allocation7 + $0x80] sm:$0xff]  ;;  %v592_v56 = vld [vmem:[#allocation7 + $0x88] sm:$0xff]  ;;  %v2603_v58 = vcombine.low %v607_v46, %v615_v47  ;;  %v2605_v59 = vcombine.low %v608_v48, %v616_v49 }
  0x49   :  { %2200 = vmatpush1.bf16.msra.mxu0 %v2651_v34  ;;  %2241 = vmatpush1.bf16.msra.mxu1 %v2653_v35  ;;  %v599_v55 = vld [vmem:[#allocation7 + $0xc0] sm:$0xff]  ;;  %v600_v57 = vld [vmem:[#allocation7 + $0xc8] sm:$0xff] }
  0x4a   :  { %2201 = vmatprep.subr.bf16.mxu0 %v2636_v36  ;;  %2242 = vmatprep.subr.bf16.mxu1 %v2638_v37  ;;  %v2588_v60 = vcombine.high %v591_v54, %v599_v55  ;;  %v2590_v61 = vcombine.high %v592_v56, %v600_v57  ;;  %v575_v62 = vld [vmem:[#allocation7] sm:$0xff]  ;;  %v576_v1 = vld [vmem:[#allocation7 + $0x8] sm:$0xff]  ;;  %v2587_v4 = vcombine.low %v591_v54, %v599_v55  ;;  %v2972_v37 = vmov 6  }
  0x4b   :  { %v583_v0 = vld [vmem:[#allocation7 + $0x40] sm:$0xff]  ;;  %v584_v2 = vld [vmem:[#allocation7 + $0x48] sm:$0xff]  ;;  %v2589_v5 = vcombine.low %v592_v56, %v600_v57 }
  0x4c   :  { %v2572_v7 = vcombine.high %v575_v62, %v583_v0  ;;  %v2574_v8 = vcombine.high %v576_v1, %v584_v2  ;;  %v815_v9 = vld [vmem:[#allocation7 + $0x780] sm:$0xff]  ;;  %v816_v11 = vld [vmem:[#allocation7 + $0x788] sm:$0xff]  ;;  %v2571_v13 = vcombine.low %v575_v62, %v583_v0  ;;  %v2573_v14 = vcombine.low %v576_v1, %v584_v2 }
  0x4d   :  { %2202 = vmatpush1.bf16.msra.mxu0 %v2635_v42  ;;  %2243 = vmatpush1.bf16.msra.mxu1 %v2637_v43  ;;  %v823_v10 = vld [vmem:[#allocation7 + $0x7c0] sm:$0xff]  ;;  %v824_v12 = vld [vmem:[#allocation7 + $0x7c8] sm:$0xff] }
  0x4e   :  { %2203 = vmatprep.subr.bf16.mxu0 %v2620_v44  ;;  %2244 = vmatprep.subr.bf16.mxu1 %v2622_v45  ;;  %v2812_v15 = vcombine.high %v815_v9, %v823_v10  ;;  %v2814_v16 = vcombine.high %v816_v11, %v824_v12  ;;  %v799_v19 = vld [vmem:[#allocation7 + $0x700] sm:$0xff]  ;;  %v800_v21 = vld [vmem:[#allocation7 + $0x708] sm:$0xff]  ;;  %v2811_v23 = vcombine.low %v815_v9, %v823_v10 }
  0x4f   :  { %v807_v20 = vld [vmem:[#allocation7 + $0x740] sm:$0xff]  ;;  %v808_v22 = vld [vmem:[#allocation7 + $0x748] sm:$0xff]  ;;  %v2813_v26 = vcombine.low %v816_v11, %v824_v12 }
  0x50   :  { %v2796_v27 = vcombine.high %v799_v19, %v807_v20  ;;  %v2798_v28 = vcombine.high %v800_v21, %v808_v22  ;;  %v783_v29 = vld [vmem:[#allocation7 + $0x680] sm:$0xff]  ;;  %v784_v31 = vld [vmem:[#allocation7 + $0x688] sm:$0xff]  ;;  %v2795_v33 = vcombine.low %v799_v19, %v807_v20  ;;  %v2797_v34 = vcombine.low %v800_v21, %v808_v22  ;;  %v3033_v19 = vld [vmem:[#allocation7 + $0x398] sm:$0xff] }
  0x51   :  { %2204 = vmatpush1.bf16.msra.mxu0 %v2619_v50  ;;  %2245 = vmatpush1.bf16.msra.mxu1 %v2621_v51  ;;  %v791_v30 = vld [vmem:[#allocation7 + $0x6c0] sm:$0xff]  ;;  %v792_v32 = vld [vmem:[#allocation7 + $0x6c8] sm:$0xff]  ;;  %3527 = vst [vmem:[#allocation15_spill] sm:$0xff] %v3033_v19  ;;  %v3039_v22 = vld [vmem:[#allocation7 + $0x3d8] sm:$0xff] }
  0x52   :  { %2205 = vmatprep.subr.bf16.mxu0 %v2604_v52  ;;  %2246 = vmatprep.subr.bf16.mxu1 %v2606_v53  ;;  %v2780_v35 = vcombine.high %v783_v29, %v791_v30  ;;  %v2782_v36 = vcombine.high %v784_v31, %v792_v32  ;;  %v2779_v38 = vcombine.low %v783_v29, %v791_v30  ;;  %v767_v41 = vld [vmem:[#allocation7 + $0x600] sm:$0xff]  ;;  %v768_v43 = vld [vmem:[#allocation7 + $0x608] sm:$0xff] }
  0x53   :  { %v2852_v63 = vpop.eup %2851  ;;  %v2781_v39 = vcombine.low %v784_v31, %v792_v32  ;;  %v775_v42 = vld [vmem:[#allocation7 + $0x640] sm:$0xff]  ;;  %v776_v45 = vld [vmem:[#allocation7 + $0x648] sm:$0xff]  ;;  %3528 = vst [vmem:[#allocation16_spill] sm:$0xff] %v3039_v22  ;;  %v3053_v31 = vld [vmem:[#allocation4 + $0x18] sm:$0xff] }
  0x54   :  { %v88_v3 = vadd.f32 1.0, %v2852_v63  ;;  %v2764_v44 = vcombine.high %v767_v41, %v775_v42  ;;  %v2766_v46 = vcombine.high %v768_v43, %v776_v45  ;;  %v2763_v47 = vcombine.low %v767_v41, %v775_v42  ;;  %v751_v49 = vld [vmem:[#allocation7 + $0x580] sm:$0xff]  ;;  %v752_v51 = vld [vmem:[#allocation7 + $0x588] sm:$0xff]  ;;  %v3055_v32 = vld [vmem:[#allocation4 + $0x20] sm:$0xff] }
  0x55   :  { %2206 = vmatpush1.bf16.msra.mxu0 %v2603_v58  ;;  %2247 = vmatpush1.bf16.msra.mxu1 %v2605_v59  ;;  %v2765_v48 = vcombine.low %v768_v43, %v776_v45  ;;  %v759_v50 = vld [vmem:[#allocation7 + $0x5c0] sm:$0xff]  ;;  %v760_v53 = vld [vmem:[#allocation7 + $0x5c8] sm:$0xff] }
  0x56   :  { %2207 = vmatprep.subr.bf16.mxu0 %v2588_v60  ;;  %v3019_v6 = vmul.f32 0.5, %v88_v3  ;;  %2248 = vmatprep.subr.bf16.mxu1 %v2590_v61  ;;  %v2748_v52 = vcombine.high %v751_v49, %v759_v50  ;;  %v2750_v54 = vcombine.high %v752_v51, %v760_v53  ;;  %v2747_v55 = vcombine.low %v751_v49, %v759_v50  ;;  %v735_v57 = vld [vmem:[#allocation7 + $0x500] sm:$0xff]  ;;  %v736_v59 = vld [vmem:[#allocation7 + $0x508] sm:$0xff] }
  0x57   :  { %v2749_v56 = vcombine.low %v752_v51, %v760_v53  ;;  %v743_v58 = vld [vmem:[#allocation7 + $0x540] sm:$0xff]  ;;  %v744_v61 = vld [vmem:[#allocation7 + $0x548] sm:$0xff] }
  0x58   :  { %246 = vperm.xlu1 %2844, %v3019_v6   ;;  %101 = vperm.xlu0 %2842, %v3019_v6   ;;  %v2732_v60 = vcombine.high %v735_v57, %v743_v58  ;;  %v2734_v62 = vcombine.high %v736_v59, %v744_v61  ;;  %v2731_v63 = vcombine.low %v735_v57, %v743_v58  ;;  %v719_v1 = vld [vmem:[#allocation7 + $0x480] sm:$0xff]  ;;  %v720_v3 = vld [vmem:[#allocation7 + $0x488] sm:$0xff] }
  0x59   :  { %2208 = vmatpush1.bf16.msra.mxu0 %v2587_v4  ;;  %2249 = vmatpush1.bf16.msra.mxu1 %v2589_v5  ;;  %v2733_v0 = vcombine.low %v736_v59, %v744_v61  ;;  %v727_v2 = vld [vmem:[#allocation7 + $0x4c0] sm:$0xff]  ;;  %v728_v5 = vld [vmem:[#allocation7 + $0x4c8] sm:$0xff] }
  0x5a   :  { %2209 = vmatprep.subr.bf16.mxu0 %v2572_v7  ;;  %2250 = vmatprep.subr.bf16.mxu1 %v2574_v8  ;;  %v2716_v4 = vcombine.high %v719_v1, %v727_v2  ;;  %v2715_v7 = vcombine.low %v719_v1, %v727_v2  ;;  %v2717_v8 = vcombine.low %v720_v3, %v728_v5  ;;  %v703_v9 = vld [vmem:[#allocation7 + $0x400] sm:$0xff]  ;;  %v704_v11 = vld [vmem:[#allocation7 + $0x408] sm:$0xff] }
  0x5b   :  { %v711_v10 = vld [vmem:[#allocation7 + $0x440] sm:$0xff]  ;;  %v3051_v30 = vld [vmem:[#allocation4 + $0x10] sm:$0xff] }
  0x5c   :  { %2845 = vset.pattern.permute.xlu1 %v2968_v17  ;;  %2843 = vset.pattern.permute.xlu0 %v2969_v18  ;;  %v2700_v12 = vcombine.high %v703_v9, %v711_v10  ;;  %v3029_v17 = vld [vmem:[#allocation7 + $0x390] sm:$0xff]  ;;  %v3049_v29 = vld [vmem:[#allocation4 + $0x8] sm:$0xff] }
  0x5d   :  { %298 = vperm.xlu1 %2845, %v3019_v6   ;;  %194 = vperm.xlu0 %2843, %v3019_v6   ;;  %3525 = vst [vmem:[#allocation13_spill] sm:$0xff] %v3029_v17  ;;  %v3031_v18 = vld [vmem:[#allocation7 + $0x3d0] sm:$0xff] }
  0x5e   :  { %2210 = vmatpush1.bf16.msra.mxu0 %v2571_v13  ;;  %2251 = vmatpush1.bf16.msra.mxu1 %v2573_v14  ;;  %v712_v13 = vld [vmem:[#allocation7 + $0x448] sm:$0xff]  ;;  %3526 = vst [vmem:[#allocation14_spill] sm:$0xff] %v3031_v18  ;;  %v2688_v21 = vcombine.high %v3029_v17, %v3031_v18 }
  0x5f   :  { %2211 = vmatprep.subr.bf16.mxu0 %v2812_v15  ;;  %2252 = vmatprep.subr.bf16.mxu1 %v2814_v16  ;;  %v2702_v14 = vcombine.high %v704_v11, %v712_v13  ;;  %v2699_v15 = vcombine.low %v703_v9, %v711_v10  ;;  %v2701_v16 = vcombine.low %v704_v11, %v712_v13 }
  0x61   :  { %2846 = vset.pattern.permute.xlu1 %v2970_v24  ;;  %2847 = vset.pattern.permute.xlu0 %v2971_v25  ;;  %v2690_v24 = vcombine.high %v3033_v19, %v3039_v22  ;;  %v104_v25 = vlaneseq }
  0x62   :  { %350 = vperm.xlu1 %2846, %v3019_v6   ;;  %402 = vperm.xlu0 %2847, %v3019_v6  }
  0x63   :  { %2212 = vmatpush2.bf16.msra.mxu0 %v2811_v23  ;;  %2253 = vmatpush2.bf16.msra.mxu1 %v2813_v26  ;;  %v105_v26 = vshrl.u32 %v104_v25, 7 }
  0x64   :  { %2213 = vmatprep.subr.bf16.mxu0 %v2796_v27  ;;  %2254 = vmatprep.subr.bf16.mxu1 %v2798_v28  ;;  %v3047_v28 = vld [vmem:[#allocation4] sm:$0xff] }
  0x65   :  { %v3045_v27 = vsub.s32 2, %v105_v26  ;;  %v3081_v45 = vsub.s32 1, %v105_v26  ;;  %v3089_v49 = vsub.s32 5, %v105_v26  ;;  %v3091_v50 = vsub.s32 6, %v105_v26 }
  0x66   :  { %2848 = vset.pattern.permute.xlu1 %v2972_v37  ;;  %2850 = vset.pattern.permute.xlu0 %v2973_v40  ;;  %v3093_v51 = vsub.s32 7, %v105_v26 }
  0x67   :  { %454 = vperm.xlu1 %2848, %v3019_v6   ;;  %2214 = vmatpush2.bf16.msra.mxu0 %v2795_v33  ;;  %3529 = vst [vmem:[#allocation17_spill] sm:$0xff] %v3045_v27  ;;  %v3057_v33 = vld [vmem:[#allocation4 + $0x28] sm:$0xff]  ;;  %v256_v37 = vrot.slane %v3049_v29, %v3045_v27  ;;  %v268_v41 = vrot.slane %v3055_v32, %v3045_v27  ;;  %3531 = vst [vmem:[#allocation19_spill] sm:$0xff] %v3081_v45 }
  0x68   :  { %2255 = vmatpush2.bf16.msra.mxu1 %v2797_v34  ;;  %2215 = vmatprep.subr.bf16.mxu0 %v2780_v35  ;;  %v3059_v34 = vld [vmem:[#allocation4 + $0x30] sm:$0xff]  ;;  %v3061_v35 = vld [vmem:[#allocation4 + $0x38] sm:$0xff]  ;;  %v272_v42 = vrot.slane %v3057_v33, %v3045_v27  ;;  %v204_v13 = vrot.slane %v3049_v29, %v3081_v45 }
  0x69   :  { %2256 = vmatprep.subr.bf16.mxu1 %v2782_v36  ;;  %v252_v36 = vrot.slane %v3047_v28, %v3045_v27  ;;  %v276_v43 = vrot.slane %v3059_v34, %v3045_v27 }
  0x6b   :  { %2849 = vset.pattern.permute.xlu1 %v2973_v40  ;;  %2216 = vmatpush2.bf16.msra.mxu0 %v2779_v38  ;;  %v3067_v38 = vsub.s32 0, %v105_v26  ;;  %v264_v40 = vrot.slane %v3053_v31, %v3045_v27 }
  0x6c   :  { %506 = vperm.xlu1 %2849, %v3019_v6   ;;  %2257 = vmatpush2.bf16.msra.mxu1 %v2781_v39  ;;  %v2718_v6 = vcombine.high %v720_v3, %v728_v5  ;;  %v260_v39 = vrot.slane %v3051_v30, %v3045_v27 }
  0x6d   :  { %2217 = vmatprep.subr.bf16.mxu0 %v2764_v44  ;;  %2258 = vmatprep.subr.bf16.mxu1 %v2766_v46  ;;  %3530 = vst [vmem:[#allocation18_spill] sm:$0xff] %v3067_v38  ;;  %v280_v44 = vrot.slane %v3061_v35, %v3045_v27  ;;  %v3083_v46 = vsub.s32 3, %v105_v26  ;;  %v111_v53 = vrot.slane %v3049_v29, %v3067_v38 }
  0x6e   :  { %v127_v57 = vrot.slane %v3057_v33, %v3067_v38  ;;  %v131_v58 = vrot.slane %v3059_v34, %v3067_v38  ;;  %v135_v59 = vrot.slane %v3061_v35, %v3067_v38 }
  0x6f   :  { %2218 = vmatpush2.bf16.msra.mxu0 %v2763_v47  ;;  %3532 = vst [vmem:[#allocation20_spill] sm:$0xff] %v3083_v46  ;;  %v3085_v47 = vld [vmem:[#allocation6] sm:$0xff]  ;;  %v308_v5 = vrot.slane %v3049_v29, %v3083_v46  ;;  %v324_v9 = vrot.slane %v3057_v33, %v3083_v46  ;;  %v328_v10 = vrot.slane %v3059_v34, %v3083_v46 }
  0x70   :  { %2259 = vmatpush2.bf16.msra.mxu1 %v2765_v48  ;;  %2219 = vmatprep.subr.bf16.mxu0 %v2748_v52  ;;  %v3087_v48 = vsub.s32 4, %v105_v26  ;;  %v107_v52 = vrot.slane %v3047_v28, %v3067_v38  ;;  %v152_v61 = vrot.slane %v3085_v47, %v3081_v45  ;;  %v168_v1 = vrot.slane %v3085_v47, %v3089_v49 }
  0x71   :  { %2260 = vmatprep.subr.bf16.mxu1 %v2750_v54  ;;  %v115_v54 = vrot.slane %v3051_v30, %v3067_v38  ;;  %v172_v2 = vrot.slane %v3085_v47, %v3091_v50  ;;  %v176_v3 = vrot.slane %v3085_v47, %v3093_v51  ;;  %v332_v11 = vrot.slane %v3061_v35, %v3083_v46 }
  0x72   :  { %3533 = vst [vmem:[#allocation21_spill] sm:$0xff] %v3087_v48 }
  0x73   :  { %2220 = vmatpush2.bf16.msra.mxu0 %v2747_v55  ;;  %v119_v55 = vrot.slane %v3053_v31, %v3067_v38 }
  0x74   :  { %2261 = vmatpush2.bf16.msra.mxu1 %v2749_v56  ;;  %2221 = vmatprep.subr.bf16.mxu0 %v2732_v60  ;;  %v123_v56 = vrot.slane %v3055_v32, %v3067_v38  ;;  %v148_v60 = vrot.slane %v3085_v47, %v3067_v38 }
  0x75   :  { %2262 = vmatprep.subr.bf16.mxu1 %v2734_v62  ;;  %v156_v62 = vrot.slane %v3085_v47, %v3045_v27 }
  0x77   :  { %2222 = vmatpush2.bf16.msra.mxu0 %v2731_v63  ;;  %v160_v63 = vrot.slane %v3085_v47, %v3083_v46 }
  0x78   :  { %2263 = vmatpush2.bf16.msra.mxu1 %v2733_v0  ;;  %2223 = vmatprep.subr.bf16.mxu0 %v2716_v4  ;;  %v164_v0 = vrot.slane %v3085_v47, %v3087_v48  ;;  %v304_v4 = vrot.slane %v3047_v28, %v3083_v46 }
  0x79   :  { %2264 = vmatprep.subr.bf16.mxu1 %v2718_v6  ;;  %v312_v6 = vrot.slane %v3051_v30, %v3083_v46 }
  0x7b   :  { %2224 = vmatpush2.bf16.msra.mxu0 %v2715_v7  ;;  %v316_v7 = vrot.slane %v3053_v31, %v3083_v46 }
  0x7c   :  { %2265 = vmatpush2.bf16.msra.mxu1 %v2717_v8  ;;  %2225 = vmatprep.subr.bf16.mxu0 %v2700_v12  ;;  %v320_v8 = vrot.slane %v3055_v32, %v3083_v46  ;;  %v200_v12 = vrot.slane %v3047_v28, %v3081_v45 }
  0x7d   :  { %2266 = vmatprep.subr.bf16.mxu1 %v2702_v14  ;;  %v208_v14 = vrot.slane %v3051_v30, %v3081_v45 }
  0x7f   :  { %2226 = vmatpush2.bf16.msra.mxu0 %v2699_v15 }
  0x80   :  { %2267 = vmatpush2.bf16.msra.mxu1 %v2701_v16  ;;  %2277 = vmatprep.subr.bf16.mxu0 %v2688_v21 }
  0x81   :  { %2318 = vmatprep.subr.bf16.mxu1 %v2690_v24 }
  0xd3   :  { %v247_v15 = vpop.permute.xlu1 %246  ;;  %v102_v26 = vpop.permute.xlu0 %101 }
  0xd4   :  { %v281_v24 = vmul.f32 %v252_v36, %v247_v15  ;;  %v282_v25 = vmul.f32 %v256_v37, %v247_v15  ;;  %v283_v23 = vmul.f32 %v260_v39, %v247_v15  ;;  %v284_v20 = vmul.f32 %v264_v40, %v247_v15 }
  0xd5   :  { %v285_v21 = vmul.f32 %v268_v41, %v247_v15  ;;  %v286_v36 = vmul.f32 %v272_v42, %v247_v15  ;;  %v287_v37 = vmul.f32 %v276_v43, %v247_v15  ;;  %v288_v39 = vmul.f32 %v280_v44, %v247_v15 }
  0xd6   :  { %v136_v40 = vmul.f32 %v107_v52, %v102_v26  ;;  %v137_v41 = vmul.f32 %v111_v53, %v102_v26  ;;  %v138_v42 = vmul.f32 %v115_v54, %v102_v26  ;;  %v139_v43 = vmul.f32 %v119_v55, %v102_v26 }
  0xd7   :  { %v140_v44 = vmul.f32 %v123_v56, %v102_v26  ;;  %v141_v52 = vmul.f32 %v127_v57, %v102_v26  ;;  %v142_v53 = vmul.f32 %v131_v58, %v102_v26  ;;  %v143_v54 = vmul.f32 %v135_v59, %v102_v26 }
  0xd8   :  { %v185_v55 = vadd.f32 %v148_v60, %v136_v40  ;;  %v186_v56 = vadd.f32 %v152_v61, %v137_v41  ;;  %v187_v57 = vadd.f32 %v156_v62, %v138_v42  ;;  %v188_v58 = vadd.f32 %v160_v63, %v139_v43  ;;  %v299_v15 = vpop.permute.xlu1 %298  ;;  %v195_v26 = vpop.permute.xlu0 %194 }
  0xd9   :  { %v189_v59 = vadd.f32 %v164_v0, %v140_v44  ;;  %v190_v60 = vadd.f32 %v168_v1, %v141_v52  ;;  %v191_v61 = vadd.f32 %v172_v2, %v142_v53  ;;  %v192_v62 = vadd.f32 %v176_v3, %v143_v54 }
  0xda   :  { %v333_v63 = vmul.f32 %v304_v4, %v299_v15  ;;  %v334_v0 = vmul.f32 %v308_v5, %v299_v15  ;;  %v335_v1 = vmul.f32 %v312_v6, %v299_v15  ;;  %v336_v2 = vmul.f32 %v316_v7, %v299_v15 }
  0xdb   :  { %v337_v47 = vmul.f32 %v320_v8, %v299_v15  ;;  %v338_v3 = vmul.f32 %v324_v9, %v299_v15  ;;  %v339_v4 = vmul.f32 %v328_v10, %v299_v15  ;;  %v340_v5 = vmul.f32 %v332_v11, %v299_v15 }
  0xdc   :  { %v229_v6 = vmul.f32 %v200_v12, %v195_v26  ;;  %v230_v7 = vmul.f32 %v204_v13, %v195_v26  ;;  %v231_v8 = vmul.f32 %v208_v14, %v195_v26  ;;  %v3534_v9 = vrot.slane %v3053_v31, %v3081_v45 }
  0xdd   :  { %v3535_v40 = vrot.slane %v3055_v32, %v3081_v45  ;;  %v3536_v41 = vrot.slane %v3057_v33, %v3081_v45  ;;  %v3537_v42 = vrot.slane %v3059_v34, %v3081_v45  ;;  %v3538_v43 = vrot.slane %v3061_v35, %v3081_v45  ;;  %v351_v44 = vpop.permute.xlu1 %350  ;;  %v403_v18 = vpop.permute.xlu0 %402 }
  0xde   :  { %v232_v10 = vmul.f32 %v3534_v9, %v195_v26  ;;  %v237_v52 = vadd.f32 %v229_v6, %v185_v55  ;;  %v238_v53 = vadd.f32 %v230_v7, %v186_v56  ;;  %v239_v54 = vadd.f32 %v231_v8, %v187_v57 }
  0xdf   :  { %v233_v11 = vmul.f32 %v3535_v40, %v195_v26  ;;  %v234_v12 = vmul.f32 %v3536_v41, %v195_v26  ;;  %v235_v13 = vmul.f32 %v3537_v42, %v195_v26  ;;  %v236_v14 = vmul.f32 %v3538_v43, %v195_v26 }
  0xe0   :  { %v240_v15 = vadd.f32 %v232_v10, %v188_v58  ;;  %v3539_v41 = vrot.slane %v3047_v28, %v3087_v48  ;;  %v3540_v42 = vrot.slane %v3049_v29, %v3087_v48  ;;  %v3541_v26 = vrot.slane %v3051_v30, %v3087_v48 }
  0xe1   :  { %v241_v9 = vadd.f32 %v233_v11, %v189_v59  ;;  %v242_v16 = vadd.f32 %v234_v12, %v190_v60  ;;  %v243_v40 = vadd.f32 %v235_v13, %v191_v61  ;;  %v244_v46 = vadd.f32 %v236_v14, %v192_v62 }
  0xe2   :  { %v385_v27 = vmul.f32 %v3539_v41, %v351_v44  ;;  %v386_v38 = vmul.f32 %v3540_v42, %v351_v44  ;;  %v387_v43 = vmul.f32 %v3541_v26, %v351_v44  ;;  %v3542_v55 = vrot.slane %v3053_v31, %v3087_v48 }
  0xe3   :  { %v3543_v57 = vrot.slane %v3055_v32, %v3087_v48  ;;  %v3544_v59 = vrot.slane %v3057_v33, %v3087_v48  ;;  %v3545_v61 = vrot.slane %v3059_v34, %v3087_v48  ;;  %v3546_v6 = vrot.slane %v3061_v35, %v3087_v48 }
  0xe4   :  { %v388_v56 = vmul.f32 %v3542_v55, %v351_v44  ;;  %v289_v8 = vadd.f32 %v281_v24, %v237_v52  ;;  %v290_v10 = vadd.f32 %v282_v25, %v238_v53  ;;  %v291_v11 = vadd.f32 %v283_v23, %v239_v54 }
  0xe5   :  { %v389_v58 = vmul.f32 %v3543_v57, %v351_v44  ;;  %v390_v60 = vmul.f32 %v3544_v59, %v351_v44  ;;  %v391_v62 = vmul.f32 %v3545_v61, %v351_v44  ;;  %v392_v7 = vmul.f32 %v3546_v6, %v351_v44 }
  0xe6   :  { %v292_v12 = vadd.f32 %v284_v20, %v240_v15  ;;  %v293_v13 = vadd.f32 %v285_v21, %v241_v9  ;;  %v294_v14 = vadd.f32 %v286_v36, %v242_v16  ;;  %v295_v41 = vadd.f32 %v287_v37, %v243_v40  ;;  %v455_v16 = vpop.permute.xlu1 %454 }
  0xe7   :  { %v296_v42 = vadd.f32 %v288_v39, %v244_v46  ;;  %v341_v26 = vadd.f32 %v333_v63, %v289_v8  ;;  %v342_v55 = vadd.f32 %v334_v0, %v290_v10  ;;  %v343_v57 = vadd.f32 %v335_v1, %v291_v11 }
  0xe8   :  { %v344_v59 = vadd.f32 %v336_v2, %v292_v12  ;;  %v345_v45 = vadd.f32 %v337_v47, %v293_v13  ;;  %v346_v22 = vadd.f32 %v338_v3, %v294_v14  ;;  %v347_v19 = vadd.f32 %v339_v4, %v295_v41 }
  0xe9   :  { %v348_v61 = vadd.f32 %v340_v5, %v296_v42  ;;  %v393_v17 = vadd.f32 %v385_v27, %v341_v26  ;;  %v394_v48 = vadd.f32 %v386_v38, %v342_v55  ;;  %v395_v44 = vadd.f32 %v387_v43, %v343_v57 }
  0xea   :  { %v396_v24 = vadd.f32 %v388_v56, %v344_v59  ;;  %v397_v25 = vadd.f32 %v389_v58, %v345_v45  ;;  %v398_v23 = vadd.f32 %v390_v60, %v346_v22  ;;  %v399_v20 = vadd.f32 %v391_v62, %v347_v19  ;;  %v507_v42 = vpop.permute.xlu1 %506 }
  0xeb   :  { %v400_v21 = vadd.f32 %v392_v7, %v348_v61  ;;  %v3547_v46 = vrot.slane %v3047_v28, %v3089_v49  ;;  %v3548_v37 = vrot.slane %v3049_v29, %v3089_v49  ;;  %v3549_v63 = vrot.slane %v3051_v30, %v3089_v49 }
  0xec   :  { %v3550_v38 = vrot.slane %v3053_v31, %v3089_v49  ;;  %v3551_v19 = vrot.slane %v3055_v32, %v3089_v49  ;;  %v3552_v0 = vrot.slane %v3057_v33, %v3089_v49  ;;  %v3553_v2 = vrot.slane %v3059_v34, %v3089_v49 }
  0xed   :  { %v437_v36 = vmul.f32 %v3547_v46, %v403_v18  ;;  %v438_v39 = vmul.f32 %v3548_v37, %v403_v18  ;;  %v439_v27 = vmul.f32 %v3549_v63, %v403_v18  ;;  %v3554_v3 = vrot.slane %v3061_v35, %v3089_v49 }
  0xee   :  { %v440_v45 = vmul.f32 %v3550_v38, %v403_v18  ;;  %v441_v22 = vmul.f32 %v3551_v19, %v403_v18  ;;  %v442_v1 = vmul.f32 %v3552_v0, %v403_v18  ;;  %v443_v47 = vmul.f32 %v3553_v2, %v403_v18 }
  0xef   :  { %v444_v4 = vmul.f32 %v3554_v3, %v403_v18  ;;  %v445_v5 = vadd.f32 %v437_v36, %v393_v17  ;;  %v446_v52 = vadd.f32 %v438_v39, %v394_v48  ;;  %v447_v53 = vadd.f32 %v439_v27, %v395_v44 }
  0xf0   :  { %v448_v54 = vadd.f32 %v440_v45, %v396_v24  ;;  %v449_v15 = vadd.f32 %v441_v22, %v397_v25  ;;  %v450_v9 = vadd.f32 %v442_v1, %v398_v23  ;;  %v451_v40 = vadd.f32 %v443_v47, %v399_v20 }
  0xf1   :  { %v452_v43 = vadd.f32 %v444_v4, %v400_v21  ;;  %v3555_v56 = vrot.slane %v3047_v28, %v3091_v50  ;;  %v3556_v60 = vrot.slane %v3049_v29, %v3091_v50  ;;  %v3557_v6 = vrot.slane %v3051_v30, %v3091_v50 }
  0xf2   :  { %v3558_v17 = vrot.slane %v3053_v31, %v3091_v50  ;;  %v3559_v7 = vrot.slane %v3055_v32, %v3091_v50  ;;  %v3560_v10 = vrot.slane %v3057_v33, %v3091_v50  ;;  %v3561_v12 = vrot.slane %v3059_v34, %v3091_v50 }
  0xf3   :  { %v489_v58 = vmul.f32 %v3555_v56, %v455_v16  ;;  %v490_v62 = vmul.f32 %v3556_v60, %v455_v16  ;;  %v491_v18 = vmul.f32 %v3557_v6, %v455_v16  ;;  %v3562_v14 = vrot.slane %v3061_v35, %v3091_v50  ;;  %v673_v6 = vld [vmem:[#allocation7 + $0x310] sm:$0xff] }
  0xf4   :  { %v492_v48 = vmul.f32 %v3558_v17, %v455_v16  ;;  %v493_v8 = vmul.f32 %v3559_v7, %v455_v16  ;;  %v494_v11 = vmul.f32 %v3560_v10, %v455_v16  ;;  %v495_v13 = vmul.f32 %v3561_v12, %v455_v16  ;;  %v674_v17 = vld [vmem:[#allocation7 + $0x318] sm:$0xff]  ;;  %v657_v10 = vld [vmem:[#allocation7 + $0x290] sm:$0xff] }
  0xf5   :  { %v496_v41 = vmul.f32 %v3562_v14, %v455_v16  ;;  %v497_v26 = vadd.f32 %v489_v58, %v445_v5  ;;  %v498_v55 = vadd.f32 %v490_v62, %v446_v52  ;;  %v499_v57 = vadd.f32 %v491_v18, %v447_v53  ;;  %v681_v18 = vld [vmem:[#allocation7 + $0x350] sm:$0xff]  ;;  %v658_v14 = vld [vmem:[#allocation7 + $0x298] sm:$0xff] }
  0xf6   :  { %v500_v59 = vadd.f32 %v492_v48, %v448_v54  ;;  %v501_v61 = vadd.f32 %v493_v8, %v449_v15  ;;  %v502_v44 = vadd.f32 %v494_v11, %v450_v9  ;;  %v503_v24 = vadd.f32 %v495_v13, %v451_v40  ;;  %v682_v48 = vld [vmem:[#allocation7 + $0x358] sm:$0xff]  ;;  %v665_v13 = vld [vmem:[#allocation7 + $0x2d0] sm:$0xff] }
  0xf7   :  { %v504_v25 = vadd.f32 %v496_v41, %v452_v43  ;;  %v3563_v23 = vrot.slane %v3047_v28, %v3093_v51  ;;  %v3564_v21 = vrot.slane %v3049_v29, %v3093_v51  ;;  %v3565_v16 = vrot.slane %v3051_v30, %v3093_v51  ;;  %v666_v41 = vld [vmem:[#allocation7 + $0x2d8] sm:$0xff] }
  0xf8   :  { %v3566_v37 = vrot.slane %v3053_v31, %v3093_v51  ;;  %v3567_v63 = vrot.slane %v3055_v32, %v3093_v51  ;;  %v3568_v28 = vrot.slane %v3057_v33, %v3093_v51  ;;  %v3569_v29 = vrot.slane %v3059_v34, %v3093_v51 }
  0xf9   :  { %v541_v20 = vmul.f32 %v3563_v23, %v507_v42  ;;  %v542_v46 = vmul.f32 %v3564_v21, %v507_v42  ;;  %v543_v36 = vmul.f32 %v3565_v16, %v507_v42  ;;  %v3570_v30 = vrot.slane %v3061_v35, %v3093_v51  ;;  %v649_v21 = vld [vmem:[#allocation7 + $0x250] sm:$0xff]  ;;  %v650_v16 = vld [vmem:[#allocation7 + $0x258] sm:$0xff] }
  0xfa   :  { %v544_v39 = vmul.f32 %v3566_v37, %v507_v42  ;;  %v545_v27 = vmul.f32 %v3567_v63, %v507_v42  ;;  %v546_v38 = vmul.f32 %v3568_v28, %v507_v42  ;;  %v547_v45 = vmul.f32 %v3569_v29, %v507_v42  ;;  %v633_v28 = vld [vmem:[#allocation7 + $0x1d0] sm:$0xff]  ;;  %v634_v29 = vld [vmem:[#allocation7 + $0x1d8] sm:$0xff] }
  0xfb   :  { %v548_v19 = vmul.f32 %v3570_v30, %v507_v42  ;;  %v549_v22 = vadd.f32 %v541_v20, %v497_v26  ;;  %v550_v0 = vadd.f32 %v542_v46, %v498_v55  ;;  %v551_v31 = vadd.f32 %v543_v36, %v499_v57  ;;  %v3571_v42 = vld [vmem:[#allocation13_spill] sm:$0xff]  ;;  %v3572_v26 = vld [vmem:[#allocation14_spill] sm:$0xff]  ;;  %v3574_v57 = vld [vmem:[#allocation15_spill] sm:$0xff] }
  0xfc   :  { %v552_v1 = vadd.f32 %v544_v39, %v500_v59  ;;  %v553_v2 = vadd.f32 %v545_v27, %v501_v61  ;;  %v554_v47 = vadd.f32 %v546_v38, %v502_v44  ;;  %v555_v32 = vadd.f32 %v547_v45, %v503_v24  ;;  %v3575_v59 = vld [vmem:[#allocation16_spill] sm:$0xff]  ;;  %v641_v20 = vld [vmem:[#allocation7 + $0x210] sm:$0xff]  ;;  %v642_v46 = vld [vmem:[#allocation7 + $0x218] sm:$0xff] }
  0xfd   :  { %v556_v3 = vadd.f32 %v548_v19, %v504_v25  ;;  %v557_v4 = vmax.f32 %v549_v22, 0.0  ;;  %v558_v5 = vmax.f32 %v550_v0, 0.0  ;;  %v559_v33 = vmax.f32 %v551_v31, 0.0  ;;  %v625_v27 = vld [vmem:[#allocation7 + $0x190] sm:$0xff]  ;;  %v626_v38 = vld [vmem:[#allocation7 + $0x198] sm:$0xff] }
  0xfe   :  { %v560_v52 = vmax.f32 %v552_v1, 0.0  ;;  %v561_v53 = vmax.f32 %v553_v2, 0.0  ;;  %v562_v54 = vmax.f32 %v554_v47, 0.0  ;;  %v563_v9 = vmax.f32 %v555_v32, 0.0  ;;  %v609_v0 = vld [vmem:[#allocation7 + $0x110] sm:$0xff]  ;;  %v610_v1 = vld [vmem:[#allocation7 + $0x118] sm:$0xff] }
  0xff   :  { %v565_v34 = vadd.f32 %v559_v33, %v557_v4  ;;  %v564_v40 = vmax.f32 %v556_v3, 0.0  ;;  %v2672_v11 = vcombine.high %v673_v6, %v681_v18  ;;  %v2674_v12 = vcombine.high %v674_v17, %v682_v48  ;;  %v617_v31 = vld [vmem:[#allocation7 + $0x150] sm:$0xff]  ;;  %v618_v2 = vld [vmem:[#allocation7 + $0x158] sm:$0xff] }
 0x100   :  { %v566_v15 = vadd.f32 %v560_v52, %v558_v5  ;;  %v3573_v55 = vcombine.low %v3571_v42, %v3572_v26  ;;  %v3576_v61 = vcombine.low %v3574_v57, %v3575_v59  ;;  %v2671_v44 = vcombine.low %v673_v6, %v681_v18  ;;  %v593_v5 = vld [vmem:[#allocation7 + $0x90] sm:$0xff]  ;;  %v594_v52 = vld [vmem:[#allocation7 + $0x98] sm:$0xff] }
 0x101   :  { %v567_v35 = vadd.f32 %v565_v34, %v561_v53  ;;  %v2673_v24 = vcombine.low %v674_v17, %v682_v48  ;;  %v2656_v25 = vcombine.high %v657_v10, %v665_v13  ;;  %v2658_v23 = vcombine.high %v658_v14, %v666_v41  ;;  %v601_v33 = vld [vmem:[#allocation7 + $0xd0] sm:$0xff]  ;;  %v602_v53 = vld [vmem:[#allocation7 + $0xd8] sm:$0xff] }
 0x102   :  { %v568_v43 = vadd.f32 %v566_v15, %v562_v54  ;;  %v2655_v36 = vcombine.low %v657_v10, %v665_v13  ;;  %v2657_v37 = vcombine.low %v658_v14, %v666_v41  ;;  %v2640_v39 = vcombine.high %v641_v20, %v649_v21  ;;  %v817_v18 = vld [vmem:[#allocation7 + $0x790] sm:$0xff]  ;;  %v818_v48 = vld [vmem:[#allocation7 + $0x798] sm:$0xff] }
 0x103   :  { %v569_v56 = vadd.f32 %v567_v35, %v563_v9  ;;  %v2642_v63 = vcombine.high %v642_v46, %v650_v16  ;;  %v2639_v45 = vcombine.low %v641_v20, %v649_v21  ;;  %v2641_v30 = vcombine.low %v642_v46, %v650_v16  ;;  %v585_v35 = vld [vmem:[#allocation7 + $0x50] sm:$0xff]  ;;  %v826_v10 = vld [vmem:[#allocation7 + $0x7d8] sm:$0xff] }
 0x104   :  { %v570_v58 = vadd.f32 %v568_v43, %v564_v40  ;;  %v2624_v19 = vcombine.high %v625_v27, %v633_v28  ;;  %v2626_v22 = vcombine.high %v626_v38, %v634_v29  ;;  %v2623_v47 = vcombine.low %v625_v27, %v633_v28  ;;  %v577_v40 = vld [vmem:[#allocation7 + $0x10] sm:$0xff]  ;;  %v578_v43 = vld [vmem:[#allocation7 + $0x18] sm:$0xff] }
 0x105   :  { %v571_v60 = vmul.f32 0.25, %v569_v56  ;;  %v2625_v32 = vcombine.low %v626_v38, %v634_v29  ;;  %v2608_v3 = vcombine.high %v609_v0, %v617_v31  ;;  %v2610_v4 = vcombine.high %v610_v1, %v618_v2  ;;  %v586_v56 = vld [vmem:[#allocation7 + $0x58] sm:$0xff]  ;;  %v825_v17 = vld [vmem:[#allocation7 + $0x7d0] sm:$0xff] }
 0x106   :  { %v572_v62 = vmul.f32 0.25, %v570_v58  ;;  %v2607_v54 = vcombine.low %v609_v0, %v617_v31  ;;  %v2609_v34 = vcombine.low %v610_v1, %v618_v2  ;;  %v2592_v15 = vcombine.high %v593_v5, %v601_v33  ;;  %v801_v41 = vld [vmem:[#allocation7 + $0x710] sm:$0xff]  ;;  %v802_v26 = vld [vmem:[#allocation7 + $0x718] sm:$0xff] }
 0x107   :  { %v3439_v7 = vpack.c.bf16 %v571_v60, %v571_v60  ;;  %v2594_v9 = vcombine.high %v594_v52, %v602_v53  ;;  %v2591_v58 = vcombine.low %v593_v5, %v601_v33  ;;  %v2593_v60 = vcombine.low %v594_v52, %v602_v53  ;;  %v809_v42 = vld [vmem:[#allocation7 + $0x750] sm:$0xff]  ;;  %v794_v20 = vld [vmem:[#allocation7 + $0x6d8] sm:$0xff] }
 0x108   :  { %v3441_v8 = vpack.c.bf16 %v572_v62, %v572_v62  ;;  %v2576_v62 = vcombine.high %v577_v40, %v585_v35  ;;  %v2578_v6 = vcombine.high %v578_v43, %v586_v56  ;;  %v2816_v13 = vcombine.high %v817_v18, %v825_v17  ;;  %v778_v27 = vld [vmem:[#allocation7 + $0x658] sm:$0xff] }
 0x109   :  { %v2818_v14 = vcombine.high %v818_v48, %v826_v10  ;;  %v2815_v57 = vcombine.low %v817_v18, %v825_v17  ;;  %v2817_v59 = vcombine.low %v818_v48, %v826_v10  ;;  %v2799_v21 = vcombine.low %v801_v41, %v809_v42  ;;  %v762_v0 = vld [vmem:[#allocation7 + $0x5d8] sm:$0xff] }
 0x10a   :  { %2227 = vmatprep.mubr.bf16.mxu0 %v3441_v8  ;;  %2268 = vmatprep.mubr.bf16.mxu1 %v3441_v8  ;;  %v746_v5 = vld [vmem:[#allocation7 + $0x558] sm:$0xff] }
 0x10b   :  { %2228 = vmatmul.mubr.bf16.vlgmr.msra.gmra.mxu0 %v3439_v7  ;;  %2269 = vmatmul.mubr.bf16.vlgmr.msra.gmra.mxu1 %v3439_v7  ;;  %v714_v18 = vld [vmem:[#allocation7 + $0x458] sm:$0xff] }
 0x10c   :  { %2278 = vmatpush1.bf16.msra.mxu0 %v3573_v55  ;;  %2319 = vmatpush1.bf16.msra.mxu1 %v3576_v61  ;;  %v810_v55 = vld [vmem:[#allocation7 + $0x758] sm:$0xff]  ;;  %v2800_v61 = vcombine.high %v801_v41, %v809_v42  ;;  %v700_v41 = vld [vmem:[#allocation7 + $0x3e8] sm:$0xff] }
 0x10d   :  { %2309 = vmatprep.mubr.bf16.mxu0 %v3441_v8  ;;  %2350 = vmatprep.mubr.bf16.mxu1 %v3441_v8  ;;  %v2801_v46 = vcombine.low %v802_v26, %v810_v55 }
 0x10e   :  { %2279 = vmatprep.subr.bf16.mxu0 %v2672_v11  ;;  %2320 = vmatprep.subr.bf16.mxu1 %v2674_v12  ;;  %v2575_v11 = vcombine.low %v577_v40, %v585_v35  ;;  %v2577_v12 = vcombine.low %v578_v43, %v586_v56  ;;  %v730_v40 = vld [vmem:[#allocation7 + $0x4d8] sm:$0xff] }
 0x110   :  { %2280 = vmatpush1.bf16.msra.mxu0 %v2671_v44  ;;  %2321 = vmatpush1.bf16.msra.mxu1 %v2673_v24  ;;  %v2802_v44 = vcombine.high %v802_v26, %v810_v55  ;;  %v785_v24 = vld [vmem:[#allocation7 + $0x690] sm:$0xff] }
 0x111   :  { %2281 = vmatprep.subr.bf16.mxu0 %v2656_v25  ;;  %2322 = vmatprep.subr.bf16.mxu1 %v2658_v23  ;;  %v793_v25 = vld [vmem:[#allocation7 + $0x6d0] sm:$0xff]  ;;  %v786_v23 = vld [vmem:[#allocation7 + $0x698] sm:$0xff] }
 0x112   :  { %v2784_v16 = vcombine.high %v785_v24, %v793_v25  ;;  %v2783_v28 = vcombine.low %v785_v24, %v793_v25  ;;  %v2785_v38 = vcombine.low %v786_v23, %v794_v20  ;;  %v684_v24 = vld [vmem:[#allocation7 + $0x368] sm:$0xff] }
 0x114   :  { %2282 = vmatpush1.bf16.msra.mxu0 %v2655_v36  ;;  %2323 = vmatpush1.bf16.msra.mxu1 %v2657_v37  ;;  %v2786_v36 = vcombine.high %v786_v23, %v794_v20  ;;  %v769_v37 = vld [vmem:[#allocation7 + $0x610] sm:$0xff] }
 0x115   :  { %2283 = vmatprep.subr.bf16.mxu0 %v2640_v39  ;;  %2324 = vmatprep.subr.bf16.mxu1 %v2642_v63  ;;  %v777_v39 = vld [vmem:[#allocation7 + $0x650] sm:$0xff]  ;;  %v770_v63 = vld [vmem:[#allocation7 + $0x618] sm:$0xff] }
 0x116   :  { %v2768_v29 = vcombine.high %v769_v37, %v777_v39  ;;  %v2767_v31 = vcombine.low %v769_v37, %v777_v39  ;;  %v2769_v1 = vcombine.low %v770_v63, %v778_v27  ;;  %v668_v37 = vld [vmem:[#allocation7 + $0x2e8] sm:$0xff] }
 0x118   :  { %2284 = vmatpush1.bf16.msra.mxu0 %v2639_v45  ;;  %2325 = vmatpush1.bf16.msra.mxu1 %v2641_v30  ;;  %v2770_v45 = vcombine.high %v770_v63, %v778_v27  ;;  %v753_v30 = vld [vmem:[#allocation7 + $0x590] sm:$0xff] }
 0x119   :  { %2285 = vmatprep.subr.bf16.mxu0 %v2624_v19  ;;  %2326 = vmatprep.subr.bf16.mxu1 %v2626_v22  ;;  %v761_v19 = vld [vmem:[#allocation7 + $0x5d0] sm:$0xff]  ;;  %v754_v22 = vld [vmem:[#allocation7 + $0x598] sm:$0xff] }
 0x11a   :  { %v2752_v2 = vcombine.high %v753_v30, %v761_v19  ;;  %v2751_v33 = vcombine.low %v753_v30, %v761_v19  ;;  %v2753_v52 = vcombine.low %v754_v22, %v762_v0  ;;  %v652_v30 = vld [vmem:[#allocation7 + $0x268] sm:$0xff] }
 0x11c   :  { %2286 = vmatpush1.bf16.msra.mxu0 %v2623_v47  ;;  %2327 = vmatpush1.bf16.msra.mxu1 %v2625_v32  ;;  %v2754_v47 = vcombine.high %v754_v22, %v762_v0  ;;  %v737_v32 = vld [vmem:[#allocation7 + $0x510] sm:$0xff] }
 0x11d   :  { %2287 = vmatprep.subr.bf16.mxu0 %v2608_v3  ;;  %2328 = vmatprep.subr.bf16.mxu1 %v2610_v4  ;;  %v745_v3 = vld [vmem:[#allocation7 + $0x550] sm:$0xff]  ;;  %v738_v4 = vld [vmem:[#allocation7 + $0x518] sm:$0xff] }
 0x11e   :  { %v2736_v53 = vcombine.high %v737_v32, %v745_v3  ;;  %v2735_v35 = vcombine.low %v737_v32, %v745_v3  ;;  %v2737_v43 = vcombine.low %v738_v4, %v746_v5  ;;  %v636_v32 = vld [vmem:[#allocation7 + $0x1e8] sm:$0xff] }
 0x120   :  { %2288 = vmatpush1.bf16.msra.mxu0 %v2607_v54  ;;  %2329 = vmatpush1.bf16.msra.mxu1 %v2609_v34  ;;  %v2738_v54 = vcombine.high %v738_v4, %v746_v5  ;;  %v721_v34 = vld [vmem:[#allocation7 + $0x490] sm:$0xff] }
 0x121   :  { %2289 = vmatprep.subr.bf16.mxu0 %v2592_v15  ;;  %2330 = vmatprep.subr.bf16.mxu1 %v2594_v9  ;;  %v729_v15 = vld [vmem:[#allocation7 + $0x4d0] sm:$0xff]  ;;  %v722_v9 = vld [vmem:[#allocation7 + $0x498] sm:$0xff] }
 0x122   :  { %v2720_v56 = vcombine.high %v721_v34, %v729_v15  ;;  %v2719_v17 = vcombine.low %v721_v34, %v729_v15  ;;  %v2721_v48 = vcombine.low %v722_v9, %v730_v40  ;;  %v620_v34 = vld [vmem:[#allocation7 + $0x168] sm:$0xff] }
 0x124   :  { %2290 = vmatpush1.bf16.msra.mxu0 %v2591_v58  ;;  %2331 = vmatpush1.bf16.msra.mxu1 %v2593_v60  ;;  %v2722_v58 = vcombine.high %v722_v9, %v730_v40  ;;  %v705_v60 = vld [vmem:[#allocation7 + $0x410] sm:$0xff] }
 0x125   :  { %2291 = vmatprep.subr.bf16.mxu0 %v2576_v62  ;;  %2332 = vmatprep.subr.bf16.mxu1 %v2578_v6  ;;  %v713_v62 = vld [vmem:[#allocation7 + $0x450] sm:$0xff]  ;;  %v706_v6 = vld [vmem:[#allocation7 + $0x418] sm:$0xff] }
 0x126   :  { %v2704_v10 = vcombine.high %v705_v60, %v713_v62  ;;  %v2703_v42 = vcombine.low %v705_v60, %v713_v62  ;;  %v2705_v26 = vcombine.low %v706_v6, %v714_v18  ;;  %v604_v60 = vld [vmem:[#allocation7 + $0xe8] sm:$0xff] }
 0x128   :  { %2292 = vmatpush1.bf16.msra.mxu0 %v2575_v11  ;;  %2333 = vmatpush1.bf16.msra.mxu1 %v2577_v12  ;;  %v2706_v11 = vcombine.high %v706_v6, %v714_v18  ;;  %v691_v12 = vld [vmem:[#allocation7 + $0x3a0] sm:$0xff] }
 0x129   :  { %2293 = vmatprep.subr.bf16.mxu0 %v2816_v13  ;;  %2334 = vmatprep.subr.bf16.mxu1 %v2818_v14  ;;  %v699_v13 = vld [vmem:[#allocation7 + $0x3e0] sm:$0xff]  ;;  %v692_v14 = vld [vmem:[#allocation7 + $0x3a8] sm:$0xff] }
 0x12a   :  { %v2692_v55 = vcombine.high %v691_v12, %v699_v13  ;;  %v2691_v25 = vcombine.low %v691_v12, %v699_v13  ;;  %v2693_v23 = vcombine.low %v692_v14, %v700_v41  ;;  %v588_v12 = vld [vmem:[#allocation7 + $0x68] sm:$0xff] }
 0x12c   :  { %2294 = vmatpush2.bf16.msra.mxu0 %v2815_v57  ;;  %2335 = vmatpush2.bf16.msra.mxu1 %v2817_v59  ;;  %v2694_v57 = vcombine.high %v692_v14, %v700_v41  ;;  %v675_v59 = vld [vmem:[#allocation7 + $0x320] sm:$0xff] }
 0x12d   :  { %2295 = vmatprep.subr.bf16.mxu0 %v2800_v61  ;;  %2336 = vmatprep.subr.bf16.mxu1 %v2802_v44  ;;  %v683_v61 = vld [vmem:[#allocation7 + $0x360] sm:$0xff]  ;;  %v676_v44 = vld [vmem:[#allocation7 + $0x328] sm:$0xff] }
 0x12e   :  { %v2676_v20 = vcombine.high %v675_v59, %v683_v61  ;;  %v2675_v39 = vcombine.low %v675_v59, %v683_v61  ;;  %v2677_v63 = vcombine.low %v676_v44, %v684_v24  ;;  %v828_v59 = vld [vmem:[#allocation7 + $0x7e8] sm:$0xff] }
 0x130   :  { %2296 = vmatpush2.bf16.msra.mxu0 %v2799_v21  ;;  %2337 = vmatpush2.bf16.msra.mxu1 %v2801_v46  ;;  %v2678_v21 = vcombine.high %v676_v44, %v684_v24  ;;  %v659_v46 = vld [vmem:[#allocation7 + $0x2a0] sm:$0xff] }
 0x131   :  { %2297 = vmatprep.subr.bf16.mxu0 %v2784_v16  ;;  %2338 = vmatprep.subr.bf16.mxu1 %v2786_v36  ;;  %v667_v16 = vld [vmem:[#allocation7 + $0x2e0] sm:$0xff]  ;;  %v660_v36 = vld [vmem:[#allocation7 + $0x2a8] sm:$0xff] }
 0x132   :  { %v2660_v27 = vcombine.high %v659_v46, %v667_v16  ;;  %v2659_v19 = vcombine.low %v659_v46, %v667_v16  ;;  %v2661_v22 = vcombine.low %v660_v36, %v668_v37  ;;  %v812_v46 = vld [vmem:[#allocation7 + $0x768] sm:$0xff] }
 0x134   :  { %2298 = vmatpush2.bf16.msra.mxu0 %v2783_v28  ;;  %2339 = vmatpush2.bf16.msra.mxu1 %v2785_v38  ;;  %v2662_v28 = vcombine.high %v660_v36, %v668_v37  ;;  %v643_v38 = vld [vmem:[#allocation7 + $0x220] sm:$0xff] }
 0x135   :  { %2299 = vmatprep.subr.bf16.mxu0 %v2768_v29  ;;  %2340 = vmatprep.subr.bf16.mxu1 %v2770_v45  ;;  %v651_v29 = vld [vmem:[#allocation7 + $0x260] sm:$0xff]  ;;  %v644_v45 = vld [vmem:[#allocation7 + $0x228] sm:$0xff] }
 0x136   :  { %v2644_v0 = vcombine.high %v643_v38, %v651_v29  ;;  %v2643_v3 = vcombine.low %v643_v38, %v651_v29  ;;  %v2645_v4 = vcombine.low %v644_v45, %v652_v30  ;;  %v796_v38 = vld [vmem:[#allocation7 + $0x6e8] sm:$0xff] }
 0x138   :  { %2300 = vmatpush2.bf16.msra.mxu0 %v2767_v31  ;;  %2341 = vmatpush2.bf16.msra.mxu1 %v2769_v1  ;;  %v2646_v31 = vcombine.high %v644_v45, %v652_v30  ;;  %v627_v1 = vld [vmem:[#allocation7 + $0x1a0] sm:$0xff] }
 0x139   :  { %2301 = vmatprep.subr.bf16.mxu0 %v2752_v2  ;;  %2342 = vmatprep.subr.bf16.mxu1 %v2754_v47  ;;  %v635_v2 = vld [vmem:[#allocation7 + $0x1e0] sm:$0xff]  ;;  %v628_v47 = vld [vmem:[#allocation7 + $0x1a8] sm:$0xff] }
 0x13a   :  { %v2628_v5 = vcombine.high %v627_v1, %v635_v2  ;;  %v2627_v15 = vcombine.low %v627_v1, %v635_v2  ;;  %v2629_v9 = vcombine.low %v628_v47, %v636_v32  ;;  %v780_v1 = vld [vmem:[#allocation7 + $0x668] sm:$0xff] }
 0x13c   :  { %2302 = vmatpush2.bf16.msra.mxu0 %v2751_v33  ;;  %2343 = vmatpush2.bf16.msra.mxu1 %v2753_v52  ;;  %v2630_v33 = vcombine.high %v628_v47, %v636_v32  ;;  %v611_v52 = vld [vmem:[#allocation7 + $0x120] sm:$0xff] }
 0x13d   :  { %2303 = vmatprep.subr.bf16.mxu0 %v2736_v53  ;;  %2344 = vmatprep.subr.bf16.mxu1 %v2738_v54  ;;  %v619_v53 = vld [vmem:[#allocation7 + $0x160] sm:$0xff]  ;;  %v612_v54 = vld [vmem:[#allocation7 + $0x128] sm:$0xff] }
 0x13e   :  { %v2612_v40 = vcombine.high %v611_v52, %v619_v53  ;;  %v2611_v62 = vcombine.low %v611_v52, %v619_v53  ;;  %v2613_v6 = vcombine.low %v612_v54, %v620_v34  ;;  %v764_v52 = vld [vmem:[#allocation7 + $0x5e8] sm:$0xff] }
 0x140   :  { %2304 = vmatpush2.bf16.msra.mxu0 %v2735_v35  ;;  %2345 = vmatpush2.bf16.msra.mxu1 %v2737_v43  ;;  %v2614_v35 = vcombine.high %v612_v54, %v620_v34  ;;  %v595_v43 = vld [vmem:[#allocation7 + $0xa0] sm:$0xff] }
 0x141   :  { %2305 = vmatprep.subr.bf16.mxu0 %v2720_v56  ;;  %2346 = vmatprep.subr.bf16.mxu1 %v2722_v58  ;;  %v603_v56 = vld [vmem:[#allocation7 + $0xe0] sm:$0xff]  ;;  %v596_v58 = vld [vmem:[#allocation7 + $0xa8] sm:$0xff] }
 0x142   :  { %v2596_v18 = vcombine.high %v595_v43, %v603_v56  ;;  %v2595_v13 = vcombine.low %v595_v43, %v603_v56  ;;  %v2597_v14 = vcombine.low %v596_v58, %v604_v60  ;;  %v748_v43 = vld [vmem:[#allocation7 + $0x568] sm:$0xff] }
 0x144   :  { %2306 = vmatpush2.bf16.msra.mxu0 %v2719_v17  ;;  %2347 = vmatpush2.bf16.msra.mxu1 %v2721_v48  ;;  %v2598_v17 = vcombine.high %v596_v58, %v604_v60  ;;  %v579_v48 = vld [vmem:[#allocation7 + $0x20] sm:$0xff] }
 0x145   :  { %2307 = vmatprep.subr.bf16.mxu0 %v2704_v10  ;;  %2348 = vmatprep.subr.bf16.mxu1 %v2706_v11  ;;  %v587_v10 = vld [vmem:[#allocation7 + $0x60] sm:$0xff]  ;;  %v580_v11 = vld [vmem:[#allocation7 + $0x28] sm:$0xff] }
 0x146   :  { %v2580_v41 = vcombine.high %v579_v48, %v587_v10  ;;  %v2579_v61 = vcombine.low %v579_v48, %v587_v10  ;;  %v2581_v44 = vcombine.low %v580_v11, %v588_v12  ;;  %v732_v48 = vld [vmem:[#allocation7 + $0x4e8] sm:$0xff] }
 0x148   :  { %2308 = vmatpush2.bf16.msra.mxu0 %v2703_v42  ;;  %2349 = vmatpush2.bf16.msra.mxu1 %v2705_v26  ;;  %v2582_v42 = vcombine.high %v580_v11, %v588_v12  ;;  %v819_v26 = vld [vmem:[#allocation7 + $0x7a0] sm:$0xff] }
 0x149   :  { %2359 = vmatprep.subr.bf16.mxu0 %v2692_v55  ;;  %2400 = vmatprep.subr.bf16.mxu1 %v2694_v57  ;;  %v827_v55 = vld [vmem:[#allocation7 + $0x7e0] sm:$0xff]  ;;  %v820_v57 = vld [vmem:[#allocation7 + $0x7a8] sm:$0xff] }
 0x14a   :  { %v2820_v24 = vcombine.high %v819_v26, %v827_v55  ;;  %v2819_v16 = vcombine.low %v819_v26, %v827_v55  ;;  %v2821_v36 = vcombine.low %v820_v57, %v828_v59  ;;  %v716_v26 = vld [vmem:[#allocation7 + $0x468] sm:$0xff] }
 0x14b   :  { %2310 = vmatmul.mubr.bf16.vlgmr.msra.gmra.mxu0 %v3439_v7  ;;  %2351 = vmatmul.mubr.bf16.vlgmr.msra.gmra.mxu1 %v3439_v7 }
 0x14c   :  { %2360 = vmatpush1.bf16.msra.mxu0 %v2691_v25  ;;  %2391 = vmatprep.mubr.bf16.mxu0 %v3441_v8  ;;  %v2822_v25 = vcombine.high %v820_v57, %v828_v59 }
 0x14d   :  { %2401 = vmatpush1.bf16.msra.mxu1 %v2693_v23  ;;  %2432 = vmatprep.mubr.bf16.mxu1 %v3441_v8  ;;  %v803_v23 = vld [vmem:[#allocation7 + $0x720] sm:$0xff] }
 0x14e   :  { %2361 = vmatprep.subr.bf16.mxu0 %v2676_v20  ;;  %2402 = vmatprep.subr.bf16.mxu1 %v2678_v21  ;;  %v811_v20 = vld [vmem:[#allocation7 + $0x760] sm:$0xff]  ;;  %v804_v21 = vld [vmem:[#allocation7 + $0x728] sm:$0xff] }
 0x14f   :  { %v2804_v37 = vcombine.high %v803_v23, %v811_v20  ;;  %v2803_v29 = vcombine.low %v803_v23, %v811_v20  ;;  %v2805_v45 = vcombine.low %v804_v21, %v812_v46  ;;  %v702_v23 = vld [vmem:[#allocation7 + $0x3f8] sm:$0xff] }
 0x150   :  { %2362 = vmatpush1.bf16.msra.mxu0 %v2675_v39  ;;  %v2806_v39 = vcombine.high %v804_v21, %v812_v46 }
 0x151   :  { %2403 = vmatpush1.bf16.msra.mxu1 %v2677_v63  ;;  %2363 = vmatprep.subr.bf16.mxu0 %v2660_v27  ;;  %v787_v63 = vld [vmem:[#allocation7 + $0x6a0] sm:$0xff] }
 0x152   :  { %2404 = vmatprep.subr.bf16.mxu1 %v2662_v28  ;;  %v795_v27 = vld [vmem:[#allocation7 + $0x6e0] sm:$0xff]  ;;  %v788_v28 = vld [vmem:[#allocation7 + $0x6a8] sm:$0xff] }
 0x153   :  { %v2788_v30 = vcombine.high %v787_v63, %v795_v27  ;;  %v2787_v2 = vcombine.low %v787_v63, %v795_v27  ;;  %v2789_v47 = vcombine.low %v788_v28, %v796_v38  ;;  %v678_v63 = vld [vmem:[#allocation7 + $0x338] sm:$0xff] }
 0x154   :  { %2364 = vmatpush1.bf16.msra.mxu0 %v2659_v19  ;;  %v2790_v19 = vcombine.high %v788_v28, %v796_v38  ;;  %v686_v27 = vld [vmem:[#allocation7 + $0x378] sm:$0xff] }
 0x155   :  { %2405 = vmatpush1.bf16.msra.mxu1 %v2661_v22  ;;  %2365 = vmatprep.subr.bf16.mxu0 %v2644_v0  ;;  %v771_v22 = vld [vmem:[#allocation7 + $0x620] sm:$0xff] }
 0x156   :  { %2406 = vmatprep.subr.bf16.mxu1 %v2646_v31  ;;  %v779_v0 = vld [vmem:[#allocation7 + $0x660] sm:$0xff]  ;;  %v772_v31 = vld [vmem:[#allocation7 + $0x628] sm:$0xff] }
 0x157   :  { %v2772_v32 = vcombine.high %v771_v22, %v779_v0  ;;  %v2771_v53 = vcombine.low %v771_v22, %v779_v0  ;;  %v2773_v54 = vcombine.low %v772_v31, %v780_v1  ;;  %v670_v22 = vld [vmem:[#allocation7 + $0x2f8] sm:$0xff] }
 0x158   :  { %2366 = vmatpush1.bf16.msra.mxu0 %v2643_v3  ;;  %v2774_v3 = vcombine.high %v772_v31, %v780_v1  ;;  %v2681_v31 = vcombine.low %v678_v63, %v686_v27 }
 0x159   :  { %2407 = vmatpush1.bf16.msra.mxu1 %v2645_v4  ;;  %2367 = vmatprep.subr.bf16.mxu0 %v2628_v5  ;;  %v755_v4 = vld [vmem:[#allocation7 + $0x5a0] sm:$0xff] }
 0x15a   :  { %2408 = vmatprep.subr.bf16.mxu1 %v2630_v33  ;;  %v763_v5 = vld [vmem:[#allocation7 + $0x5e0] sm:$0xff]  ;;  %v756_v33 = vld [vmem:[#allocation7 + $0x5a8] sm:$0xff] }
 0x15b   :  { %v2756_v34 = vcombine.high %v755_v4, %v763_v5  ;;  %v2755_v56 = vcombine.low %v755_v4, %v763_v5  ;;  %v2757_v58 = vcombine.low %v756_v33, %v764_v52  ;;  %v654_v4 = vld [vmem:[#allocation7 + $0x278] sm:$0xff] }
 0x15c   :  { %2368 = vmatpush1.bf16.msra.mxu0 %v2627_v15  ;;  %v2758_v15 = vcombine.high %v756_v33, %v764_v52 }
 0x15d   :  { %2409 = vmatpush1.bf16.msra.mxu1 %v2629_v9  ;;  %2369 = vmatprep.subr.bf16.mxu0 %v2612_v40  ;;  %v739_v9 = vld [vmem:[#allocation7 + $0x520] sm:$0xff] }
 0x15e   :  { %2410 = vmatprep.subr.bf16.mxu1 %v2614_v35  ;;  %v747_v40 = vld [vmem:[#allocation7 + $0x560] sm:$0xff]  ;;  %v740_v35 = vld [vmem:[#allocation7 + $0x528] sm:$0xff] }
 0x15f   :  { %v2740_v60 = vcombine.high %v739_v9, %v747_v40  ;;  %v2739_v10 = vcombine.low %v739_v9, %v747_v40  ;;  %v2741_v11 = vcombine.low %v740_v35, %v748_v43  ;;  %v638_v9 = vld [vmem:[#allocation7 + $0x1f8] sm:$0xff] }
 0x160   :  { %2370 = vmatpush1.bf16.msra.mxu0 %v2611_v62  ;;  %v2742_v62 = vcombine.high %v740_v35, %v748_v43 }
 0x161   :  { %2411 = vmatpush1.bf16.msra.mxu1 %v2613_v6  ;;  %2371 = vmatprep.subr.bf16.mxu0 %v2596_v18  ;;  %v723_v6 = vld [vmem:[#allocation7 + $0x4a0] sm:$0xff] }
 0x162   :  { %2412 = vmatprep.subr.bf16.mxu1 %v2598_v17  ;;  %v731_v18 = vld [vmem:[#allocation7 + $0x4e0] sm:$0xff]  ;;  %v724_v17 = vld [vmem:[#allocation7 + $0x4a8] sm:$0xff] }
 0x163   :  { %v2724_v12 = vcombine.high %v723_v6, %v731_v18  ;;  %v2723_v55 = vcombine.low %v723_v6, %v731_v18  ;;  %v2725_v57 = vcombine.low %v724_v17, %v732_v48 }
 0x164   :  { %2372 = vmatpush1.bf16.msra.mxu0 %v2595_v13  ;;  %v2726_v13 = vcombine.high %v724_v17, %v732_v48 }
 0x165   :  { %2413 = vmatpush1.bf16.msra.mxu1 %v2597_v14  ;;  %2373 = vmatprep.subr.bf16.mxu0 %v2580_v41  ;;  %v707_v14 = vld [vmem:[#allocation7 + $0x420] sm:$0xff] }
 0x166   :  { %2414 = vmatprep.subr.bf16.mxu1 %v2582_v42  ;;  %v715_v41 = vld [vmem:[#allocation7 + $0x460] sm:$0xff]  ;;  %v708_v42 = vld [vmem:[#allocation7 + $0x428] sm:$0xff] }
 0x167   :  { %v2708_v59 = vcombine.high %v707_v14, %v715_v41  ;;  %v2707_v20 = vcombine.low %v707_v14, %v715_v41  ;;  %v2709_v21 = vcombine.low %v708_v42, %v716_v26 }
 0x168   :  { %2374 = vmatpush1.bf16.msra.mxu0 %v2579_v61  ;;  %v2710_v61 = vcombine.high %v708_v42, %v716_v26 }
 0x169   :  { %2415 = vmatpush1.bf16.msra.mxu1 %v2581_v44  ;;  %2375 = vmatprep.subr.bf16.mxu0 %v2820_v24  ;;  %v693_v44 = vld [vmem:[#allocation7 + $0x3b0] sm:$0xff] }
 0x16a   :  { %2416 = vmatprep.subr.bf16.mxu1 %v2822_v25  ;;  %v701_v24 = vld [vmem:[#allocation7 + $0x3f0] sm:$0xff]  ;;  %v694_v25 = vld [vmem:[#allocation7 + $0x3b8] sm:$0xff] }
 0x16b   :  { %v2696_v46 = vcombine.high %v693_v44, %v701_v24  ;;  %v2697_v28 = vcombine.low %v694_v25, %v702_v23 }
 0x16c   :  { %2376 = vmatpush2.bf16.msra.mxu0 %v2819_v16  ;;  %v2698_v16 = vcombine.high %v694_v25, %v702_v23 }
 0x16d   :  { %2417 = vmatpush2.bf16.msra.mxu1 %v2821_v36  ;;  %2377 = vmatprep.subr.bf16.mxu0 %v2804_v37  ;;  %v677_v36 = vld [vmem:[#allocation7 + $0x330] sm:$0xff] }
 0x16e   :  { %2418 = vmatprep.subr.bf16.mxu1 %v2806_v39  ;;  %v685_v37 = vld [vmem:[#allocation7 + $0x370] sm:$0xff]  ;;  %v2695_v39 = vcombine.low %v693_v44, %v701_v24 }
 0x16f   :  { %v2680_v38 = vcombine.high %v677_v36, %v685_v37  ;;  %v2679_v0 = vcombine.low %v677_v36, %v685_v37 }
 0x170   :  { %2378 = vmatpush2.bf16.msra.mxu0 %v2803_v29  ;;  %v661_v29 = vld [vmem:[#allocation7 + $0x2b0] sm:$0xff] }
 0x171   :  { %2419 = vmatpush2.bf16.msra.mxu1 %v2805_v45  ;;  %2379 = vmatprep.subr.bf16.mxu0 %v2788_v30  ;;  %v669_v45 = vld [vmem:[#allocation7 + $0x2f0] sm:$0xff]  ;;  %v2682_v30 = vcombine.high %v678_v63, %v686_v27 }
 0x172   :  { %2420 = vmatprep.subr.bf16.mxu1 %v2790_v19  ;;  %v662_v19 = vld [vmem:[#allocation7 + $0x2b8] sm:$0xff]  ;;  %v2664_v1 = vcombine.high %v661_v29, %v669_v45  ;;  %v2663_v5 = vcombine.low %v661_v29, %v669_v45  ;;  %v805_v27 = vld [vmem:[#allocation7 + $0x730] sm:$0xff] }
 0x173   :  { %v2665_v33 = vcombine.low %v662_v19, %v670_v22  ;;  %v814_v29 = vld [vmem:[#allocation7 + $0x778] sm:$0xff] }
 0x174   :  { %2380 = vmatpush2.bf16.msra.mxu0 %v2787_v2  ;;  %v2666_v2 = vcombine.high %v662_v19, %v670_v22 }
 0x175   :  { %2421 = vmatpush2.bf16.msra.mxu1 %v2789_v47  ;;  %2381 = vmatprep.subr.bf16.mxu0 %v2772_v32  ;;  %v645_v47 = vld [vmem:[#allocation7 + $0x230] sm:$0xff] }
 0x176   :  { %2422 = vmatprep.subr.bf16.mxu1 %v2774_v3  ;;  %v653_v32 = vld [vmem:[#allocation7 + $0x270] sm:$0xff]  ;;  %v646_v3 = vld [vmem:[#allocation7 + $0x238] sm:$0xff] }
 0x177   :  { %v2648_v52 = vcombine.high %v645_v47, %v653_v32  ;;  %v2649_v40 = vcombine.low %v646_v3, %v654_v4 }
 0x178   :  { %2382 = vmatpush2.bf16.msra.mxu0 %v2771_v53  ;;  %v2650_v53 = vcombine.high %v646_v3, %v654_v4 }
 0x179   :  { %2423 = vmatpush2.bf16.msra.mxu1 %v2773_v54  ;;  %2383 = vmatprep.subr.bf16.mxu0 %v2756_v34  ;;  %v629_v54 = vld [vmem:[#allocation7 + $0x1b0] sm:$0xff] }
 0x17a   :  { %2424 = vmatprep.subr.bf16.mxu1 %v2758_v15  ;;  %v637_v34 = vld [vmem:[#allocation7 + $0x1f0] sm:$0xff]  ;;  %v630_v15 = vld [vmem:[#allocation7 + $0x1b8] sm:$0xff] }
 0x17b   :  { %v2632_v35 = vcombine.high %v629_v54, %v637_v34  ;;  %v2634_v43 = vcombine.high %v630_v15, %v638_v9  ;;  %v2631_v6 = vcombine.low %v629_v54, %v637_v34  ;;  %v2633_v18 = vcombine.low %v630_v15, %v638_v9 }
 0x17c   :  { %2384 = vmatpush2.bf16.msra.mxu0 %v2755_v56  ;;  %v613_v56 = vld [vmem:[#allocation7 + $0x130] sm:$0xff] }
 0x17d   :  { %2425 = vmatpush2.bf16.msra.mxu1 %v2757_v58  ;;  %2385 = vmatprep.subr.bf16.mxu0 %v2740_v60  ;;  %v621_v58 = vld [vmem:[#allocation7 + $0x170] sm:$0xff]  ;;  %v614_v60 = vld [vmem:[#allocation7 + $0x138] sm:$0xff] }
 0x17e   :  { %2426 = vmatprep.subr.bf16.mxu1 %v2742_v62  ;;  %v622_v62 = vld [vmem:[#allocation7 + $0x178] sm:$0xff]  ;;  %v2616_v17 = vcombine.high %v613_v56, %v621_v58  ;;  %v2615_v14 = vcombine.low %v613_v56, %v621_v58 }
 0x17f   :  { %v2618_v48 = vcombine.high %v614_v60, %v622_v62  ;;  %v2617_v41 = vcombine.low %v614_v60, %v622_v62 }
 0x180   :  { %2386 = vmatpush2.bf16.msra.mxu0 %v2739_v10  ;;  %v597_v10 = vld [vmem:[#allocation7 + $0xb0] sm:$0xff] }
 0x181   :  { %2427 = vmatpush2.bf16.msra.mxu1 %v2741_v11  ;;  %2387 = vmatprep.subr.bf16.mxu0 %v2724_v12  ;;  %v605_v11 = vld [vmem:[#allocation7 + $0xf0] sm:$0xff]  ;;  %v598_v12 = vld [vmem:[#allocation7 + $0xb8] sm:$0xff] }
 0x182   :  { %2428 = vmatprep.subr.bf16.mxu1 %v2726_v13  ;;  %v606_v13 = vld [vmem:[#allocation7 + $0xf8] sm:$0xff]  ;;  %v2600_v42 = vcombine.high %v597_v10, %v605_v11  ;;  %v2599_v44 = vcombine.low %v597_v10, %v605_v11 }
 0x183   :  { %v2602_v26 = vcombine.high %v598_v12, %v606_v13  ;;  %v2601_v24 = vcombine.low %v598_v12, %v606_v13 }
 0x184   :  { %2388 = vmatpush2.bf16.msra.mxu0 %v2723_v55  ;;  %v581_v55 = vld [vmem:[#allocation7 + $0x30] sm:$0xff] }
 0x185   :  { %2429 = vmatpush2.bf16.msra.mxu1 %v2725_v57  ;;  %2389 = vmatprep.subr.bf16.mxu0 %v2708_v59  ;;  %v589_v57 = vld [vmem:[#allocation7 + $0x70] sm:$0xff]  ;;  %v582_v59 = vld [vmem:[#allocation7 + $0x38] sm:$0xff] }
 0x186   :  { %2430 = vmatprep.subr.bf16.mxu1 %v2710_v61  ;;  %v590_v61 = vld [vmem:[#allocation7 + $0x78] sm:$0xff]  ;;  %v2584_v25 = vcombine.high %v581_v55, %v589_v57  ;;  %v2583_v36 = vcombine.low %v581_v55, %v589_v57 }
 0x187   :  { %v2586_v23 = vcombine.high %v582_v59, %v590_v61  ;;  %v2585_v37 = vcombine.low %v582_v59, %v590_v61 }
 0x188   :  { %2390 = vmatpush2.bf16.msra.mxu0 %v2707_v20  ;;  %v821_v20 = vld [vmem:[#allocation7 + $0x7b0] sm:$0xff] }
 0x189   :  { %2431 = vmatpush2.bf16.msra.mxu1 %v2709_v21  ;;  %2441 = vmatprep.subr.bf16.mxu0 %v2696_v46  ;;  %v829_v21 = vld [vmem:[#allocation7 + $0x7f0] sm:$0xff]  ;;  %v822_v46 = vld [vmem:[#allocation7 + $0x7b8] sm:$0xff] }
 0x18a   :  { %2482 = vmatprep.subr.bf16.mxu1 %v2698_v16  ;;  %v830_v16 = vld [vmem:[#allocation7 + $0x7f8] sm:$0xff]  ;;  %v2823_v45 = vcombine.low %v821_v20, %v829_v21 }
 0x18b   :  { %2392 = vmatmul.mubr.bf16.vlgmr.msra.gmra.mxu0 %v3439_v7  ;;  %v2826_v63 = vcombine.high %v822_v46, %v830_v16 }
 0x18c   :  { %2433 = vmatmul.mubr.bf16.vlgmr.msra.gmra.mxu1 %v3439_v7  ;;  %2442 = vmatpush1.bf16.msra.mxu0 %v2695_v39  ;;  %v2824_v39 = vcombine.high %v821_v20, %v829_v21 }
 0x18d   :  { %2473 = vmatprep.mubr.bf16.mxu0 %v3441_v8  ;;  %2483 = vmatpush1.bf16.msra.mxu1 %v2697_v28  ;;  %v813_v28 = vld [vmem:[#allocation7 + $0x770] sm:$0xff] }
 0x18e   :  { %2514 = vmatprep.mubr.bf16.mxu1 %v3441_v8  ;;  %2443 = vmatprep.subr.bf16.mxu0 %v2680_v38  ;;  %v2647_v8 = vcombine.low %v645_v47, %v653_v32  ;;  %v806_v38 = vld [vmem:[#allocation7 + $0x738] sm:$0xff]  ;;  %v2808_v19 = vcombine.high %v805_v27, %v813_v28  ;;  %v2807_v47 = vcombine.low %v805_v27, %v813_v28  ;;  %v3578_v28 = vld [vmem:[#allocation17_spill] sm:$0xff] }
 0x18f   :  { %2484 = vmatprep.subr.bf16.mxu1 %v2682_v30  ;;  %v2825_v30 = vcombine.low %v822_v46, %v830_v16  ;;  %v2810_v22 = vcombine.high %v806_v38, %v814_v29  ;;  %v2809_v32 = vcombine.low %v806_v38, %v814_v29  ;;  %v3579_v29 = vld [vmem:[#allocation19_spill] sm:$0xff] }
 0x190   :  { %2444 = vmatpush1.bf16.msra.mxu0 %v2679_v0  ;;  %v789_v0 = vld [vmem:[#allocation7 + $0x6b0] sm:$0xff] }
 0x191   :  { %2485 = vmatpush1.bf16.msra.mxu1 %v2681_v31  ;;  %2445 = vmatprep.subr.bf16.mxu0 %v2664_v1  ;;  %v797_v31 = vld [vmem:[#allocation7 + $0x6f0] sm:$0xff]  ;;  %v790_v1 = vld [vmem:[#allocation7 + $0x6b8] sm:$0xff] }
 0x192   :  { %2486 = vmatprep.subr.bf16.mxu1 %v2666_v2  ;;  %v798_v2 = vld [vmem:[#allocation7 + $0x6f8] sm:$0xff]  ;;  %v2792_v3 = vcombine.high %v789_v0, %v797_v31  ;;  %v2791_v54 = vcombine.low %v789_v0, %v797_v31 }
 0x193   :  { %v2794_v4 = vcombine.high %v790_v1, %v798_v2  ;;  %v2793_v34 = vcombine.low %v790_v1, %v798_v2 }
 0x194   :  { %2446 = vmatpush1.bf16.msra.mxu0 %v2663_v5  ;;  %v773_v5 = vld [vmem:[#allocation7 + $0x630] sm:$0xff] }
 0x195   :  { %2487 = vmatpush1.bf16.msra.mxu1 %v2665_v33  ;;  %2447 = vmatprep.subr.bf16.mxu0 %v2648_v52  ;;  %v781_v33 = vld [vmem:[#allocation7 + $0x670] sm:$0xff]  ;;  %v774_v52 = vld [vmem:[#allocation7 + $0x638] sm:$0xff] }
 0x196   :  { %2488 = vmatprep.subr.bf16.mxu1 %v2650_v53  ;;  %v782_v53 = vld [vmem:[#allocation7 + $0x678] sm:$0xff]  ;;  %v2776_v15 = vcombine.high %v773_v5, %v781_v33  ;;  %v2775_v56 = vcombine.low %v773_v5, %v781_v33 }
 0x197   :  { %v2778_v9 = vcombine.high %v774_v52, %v782_v53  ;;  %v2777_v58 = vcombine.low %v774_v52, %v782_v53 }
 0x198   :  { %2448 = vmatpush1.bf16.msra.mxu0 %v2647_v8  ;;  %v757_v8 = vld [vmem:[#allocation7 + $0x5b0] sm:$0xff] }
 0x199   :  { %2489 = vmatpush1.bf16.msra.mxu1 %v2649_v40  ;;  %2449 = vmatprep.subr.bf16.mxu0 %v2632_v35  ;;  %v765_v40 = vld [vmem:[#allocation7 + $0x5f0] sm:$0xff]  ;;  %v758_v35 = vld [vmem:[#allocation7 + $0x5b8] sm:$0xff] }
 0x19a   :  { %2490 = vmatprep.subr.bf16.mxu1 %v2634_v43  ;;  %v766_v43 = vld [vmem:[#allocation7 + $0x5f8] sm:$0xff]  ;;  %v2760_v60 = vcombine.high %v757_v8, %v765_v40  ;;  %v2759_v10 = vcombine.low %v757_v8, %v765_v40 }
 0x19b   :  { %v2762_v62 = vcombine.high %v758_v35, %v766_v43  ;;  %v2761_v11 = vcombine.low %v758_v35, %v766_v43 }
 0x19c   :  { %2450 = vmatpush1.bf16.msra.mxu0 %v2631_v6  ;;  %v741_v6 = vld [vmem:[#allocation7 + $0x530] sm:$0xff] }
 0x19d   :  { %2491 = vmatpush1.bf16.msra.mxu1 %v2633_v18  ;;  %2451 = vmatprep.subr.bf16.mxu0 %v2616_v17  ;;  %v749_v18 = vld [vmem:[#allocation7 + $0x570] sm:$0xff]  ;;  %v742_v17 = vld [vmem:[#allocation7 + $0x538] sm:$0xff] }
 0x19e   :  { %2492 = vmatprep.subr.bf16.mxu1 %v2618_v48  ;;  %v750_v48 = vld [vmem:[#allocation7 + $0x578] sm:$0xff]  ;;  %v2744_v12 = vcombine.high %v741_v6, %v749_v18  ;;  %v2743_v55 = vcombine.low %v741_v6, %v749_v18 }
 0x19f   :  { %v2746_v13 = vcombine.high %v742_v17, %v750_v48  ;;  %v2745_v57 = vcombine.low %v742_v17, %v750_v48 }
 0x1a0   :  { %2452 = vmatpush1.bf16.msra.mxu0 %v2615_v14  ;;  %v725_v14 = vld [vmem:[#allocation7 + $0x4b0] sm:$0xff] }
 0x1a1   :  { %2493 = vmatpush1.bf16.msra.mxu1 %v2617_v41  ;;  %2453 = vmatprep.subr.bf16.mxu0 %v2600_v42  ;;  %v733_v41 = vld [vmem:[#allocation7 + $0x4f0] sm:$0xff]  ;;  %v726_v42 = vld [vmem:[#allocation7 + $0x4b8] sm:$0xff] }
 0x1a2   :  { %2494 = vmatprep.subr.bf16.mxu1 %v2602_v26  ;;  %v734_v26 = vld [vmem:[#allocation7 + $0x4f8] sm:$0xff]  ;;  %v2728_v59 = vcombine.high %v725_v14, %v733_v41  ;;  %v2727_v20 = vcombine.low %v725_v14, %v733_v41 }
 0x1a3   :  { %v2730_v61 = vcombine.high %v726_v42, %v734_v26  ;;  %v2729_v21 = vcombine.low %v726_v42, %v734_v26 }
 0x1a4   :  { %2454 = vmatpush1.bf16.msra.mxu0 %v2599_v44  ;;  %v709_v44 = vld [vmem:[#allocation7 + $0x430] sm:$0xff] }
 0x1a5   :  { %2495 = vmatpush1.bf16.msra.mxu1 %v2601_v24  ;;  %2455 = vmatprep.subr.bf16.mxu0 %v2584_v25  ;;  %v717_v24 = vld [vmem:[#allocation7 + $0x470] sm:$0xff]  ;;  %v710_v25 = vld [vmem:[#allocation7 + $0x438] sm:$0xff] }
 0x1a6   :  { %2496 = vmatprep.subr.bf16.mxu1 %v2586_v23  ;;  %v718_v23 = vld [vmem:[#allocation7 + $0x478] sm:$0xff]  ;;  %v2712_v46 = vcombine.high %v709_v44, %v717_v24 }
 0x1a7   :  { %v2714_v16 = vcombine.high %v710_v25, %v718_v23 }
 0x1a8   :  { %2456 = vmatpush1.bf16.msra.mxu0 %v2583_v36  ;;  %v2711_v36 = vcombine.low %v709_v44, %v717_v24 }
 0x1a9   :  { %2497 = vmatpush1.bf16.msra.mxu1 %v2585_v37  ;;  %2457 = vmatprep.subr.bf16.mxu0 %v2824_v39  ;;  %v2713_v37 = vcombine.low %v710_v25, %v718_v23  ;;  %v831_v39 = vld [vmem:[#allocation9] sm:$0xff] }
 0x1aa   :  { %2498 = vmatprep.subr.bf16.mxu1 %v2826_v63  ;;  %v3577_v63 = vld [vmem:[#allocation18_spill] sm:$0xff]  ;;  %v846_v38 = vrot.slane %v831_v39, %v3578_v28  ;;  %v866_v8 = vrot.slane %v831_v39, %v3093_v51 }
 0x1ab   :  { %v838_v27 = vrot.slane %v831_v39, %v3577_v63 }
 0x1ac   :  { %2458 = vmatpush2.bf16.msra.mxu0 %v2823_v45  ;;  %v842_v45 = vrot.slane %v831_v39, %v3579_v29 }
 0x1ad   :  { %2499 = vmatpush2.bf16.msra.mxu1 %v2825_v30  ;;  %2459 = vmatprep.subr.bf16.mxu0 %v2808_v19  ;;  %v3580_v30 = vld [vmem:[#allocation20_spill] sm:$0xff] }
 0x1ae   :  { %2500 = vmatprep.subr.bf16.mxu1 %v2810_v22  ;;  %v850_v19 = vrot.slane %v831_v39, %v3580_v30 }
 0x1b0   :  { %2460 = vmatpush2.bf16.msra.mxu0 %v2807_v47 }
 0x1b1   :  { %2501 = vmatpush2.bf16.msra.mxu1 %v2809_v32  ;;  %2461 = vmatprep.subr.bf16.mxu0 %v2792_v3 }
 0x1b2   :  { %2502 = vmatprep.subr.bf16.mxu1 %v2794_v4 }
 0x1b4   :  { %2462 = vmatpush2.bf16.msra.mxu0 %v2791_v54 }
 0x1b5   :  { %2503 = vmatpush2.bf16.msra.mxu1 %v2793_v34  ;;  %2463 = vmatprep.subr.bf16.mxu0 %v2776_v15  ;;  %v862_v15 = vrot.slane %v831_v39, %v3091_v50 }
 0x1b6   :  { %2504 = vmatprep.subr.bf16.mxu1 %v2778_v9  ;;  %v858_v9 = vrot.slane %v831_v39, %v3089_v49 }
 0x1b8   :  { %2464 = vmatpush2.bf16.msra.mxu0 %v2775_v56 }
 0x1b9   :  { %2505 = vmatpush2.bf16.msra.mxu1 %v2777_v58  ;;  %2465 = vmatprep.subr.bf16.mxu0 %v2760_v60 }
 0x1ba   :  { %2506 = vmatprep.subr.bf16.mxu1 %v2762_v62 }
 0x1bc   :  { %2466 = vmatpush2.bf16.msra.mxu0 %v2759_v10 }
 0x1bd   :  { %2507 = vmatpush2.bf16.msra.mxu1 %v2761_v11  ;;  %2467 = vmatprep.subr.bf16.mxu0 %v2744_v12 }
 0x1be   :  { %2508 = vmatprep.subr.bf16.mxu1 %v2746_v13  ;;  %v832_v13 = vld [vmem:[#allocation9 + $0x8] sm:$0xff] }
 0x1bf   :  { %v870_v14 = vrot.slane %v832_v13, %v3577_v63  ;;  %v874_v41 = vrot.slane %v832_v13, %v3579_v29  ;;  %v878_v26 = vrot.slane %v832_v13, %v3578_v28  ;;  %v890_v63 = vrot.slane %v832_v13, %v3089_v49 }
 0x1c0   :  { %2468 = vmatpush2.bf16.msra.mxu0 %v2743_v55  ;;  %v882_v55 = vrot.slane %v832_v13, %v3580_v30  ;;  %v894_v28 = vrot.slane %v832_v13, %v3091_v50 }
 0x1c1   :  { %2509 = vmatpush2.bf16.msra.mxu1 %v2745_v57  ;;  %2469 = vmatprep.subr.bf16.mxu0 %v2728_v59 }
 0x1c2   :  { %2510 = vmatprep.subr.bf16.mxu1 %v2730_v61 }
 0x1c4   :  { %2470 = vmatpush2.bf16.msra.mxu0 %v2727_v20 }
 0x1c5   :  { %2511 = vmatpush2.bf16.msra.mxu1 %v2729_v21  ;;  %2471 = vmatprep.subr.bf16.mxu0 %v2712_v46 }
 0x1c6   :  { %2512 = vmatprep.subr.bf16.mxu1 %v2714_v16 }
 0x1c8   :  { %2472 = vmatpush2.bf16.msra.mxu0 %v2711_v36 }
 0x1c9   :  { %2513 = vmatpush2.bf16.msra.mxu1 %v2713_v37 }
 0x1cb   :  { %2474 = vmatmul.mubr.bf16.vlgmr.msra.gmra.mxu0 %v3439_v7  ;;  %v2229_v22 = vpop.f32.mrf.mxu0  ;;  %v2270_v0 = vpop.f32.mrf.mxu1 }
 0x1cc   :  { %2515 = vmatmul.mubr.bf16.vlgmr.msra.gmra.mxu1 %v3439_v7  ;;  %v2230_v2 = vadd.f32 %v2229_v22, %v838_v27  ;;  %v2271_v47 = vadd.f32 %v2270_v0, %v846_v38  ;;  %v3581_v7 = vld [vmem:[#allocation21_spill] sm:$0xff]  ;;  %v898_v38 = vrot.slane %v832_v13, %v3093_v51 }
 0x1cd   :  { %v2231_v31 = vpop.f32.mrf.mxu0  ;;  %v2272_v1 = vpop.f32.mrf.mxu1  ;;  %v854_v34 = vrot.slane %v831_v39, %v3581_v7  ;;  %v886_v39 = vrot.slane %v832_v13, %v3581_v7 }
 0x1ce   :  { %v2232_v32 = vadd.f32 %v2231_v31, %v842_v45  ;;  %v2273_v3 = vadd.f32 %v2272_v1, %v850_v19 }
 0x1cf   :  { %v2233_v4 = vpop.f32.mrf.mxu0  ;;  %v2274_v5 = vpop.f32.mrf.mxu1 }
 0x1d0   :  { %v2539_v33 = vcombine.low %v2230_v2, %v2232_v32  ;;  %v2540_v52 = vcombine.low %v2271_v47, %v2273_v3 }
 0x1d1   :  { %v2234_v53 = vpop.f32.mrf.mxu0  ;;  %v2275_v54 = vpop.f32.mrf.mxu1 }
 0x1d2   :  { %2555 = vst [vmem:[%s3510_s5] sm:$0xff] %v2539_v33  ;;  %2556 = vst [vmem:[%s3510_s5 + $0x8] sm:$0xff] %v2540_v52 }
 0x20b   :  { %v2311_v40 = vpop.f32.mrf.mxu0  ;;  %v2352_v35 = vpop.f32.mrf.mxu1 }
 0x20c   :  { %v2312_v58 = vadd.f32 %v2311_v40, %v854_v34  ;;  %v2353_v60 = vadd.f32 %v2352_v35, %v862_v15 }
 0x20d   :  { %v2313_v43 = vpop.f32.mrf.mxu0  ;;  %v2354_v56 = vpop.f32.mrf.mxu1 }
 0x20e   :  { %v2314_v62 = vadd.f32 %v2313_v43, %v858_v9  ;;  %v2355_v6 = vadd.f32 %v2354_v56, %v866_v8 }
 0x20f   :  { %v2315_v18 = vpop.f32.mrf.mxu0  ;;  %v2356_v17 = vpop.f32.mrf.mxu1 }
 0x210   :  { %v2541_v48 = vcombine.low %v2312_v58, %v2314_v62  ;;  %v2542_v10 = vcombine.low %v2353_v60, %v2355_v6 }
 0x211   :  { %v2316_v11 = vpop.f32.mrf.mxu0  ;;  %v2357_v12 = vpop.f32.mrf.mxu1 }
 0x212   :  { %2557 = vst [vmem:[%s3510_s5 + $0x10] sm:$0xff] %v2541_v48  ;;  %2558 = vst [vmem:[%s3510_s5 + $0x18] sm:$0xff] %v2542_v10 }
 0x24b   :  { %v2393_v42 = vpop.f32.mrf.mxu0 }
 0x24c   :  { %v2434_v57 = vpop.f32.mrf.mxu1  ;;  %v2394_v61 = vadd.f32 %v2393_v42, %v870_v14 }
 0x24d   :  { %v2395_v59 = vpop.f32.mrf.mxu0  ;;  %v2435_v25 = vadd.f32 %v2434_v57, %v878_v26 }
 0x24e   :  { %v2396_v44 = vadd.f32 %v2395_v59, %v874_v41  ;;  %v2436_v24 = vpop.f32.mrf.mxu1 }
 0x24f   :  { %v2437_v23 = vadd.f32 %v2436_v24, %v882_v55  ;;  %v2397_v20 = vpop.f32.mrf.mxu0 }
 0x250   :  { %v2543_v21 = vcombine.low %v2394_v61, %v2396_v44  ;;  %v2438_v46 = vpop.f32.mrf.mxu1 }
 0x251   :  { %v2544_v16 = vcombine.low %v2435_v25, %v2437_v23  ;;  %v2398_v36 = vpop.f32.mrf.mxu0 }
 0x252   :  { %2559 = vst [vmem:[%s3510_s5 + $0x20] sm:$0xff] %v2543_v21  ;;  %v2439_v37 = vpop.f32.mrf.mxu1 }
 0x253   :  { %2560 = vst [vmem:[%s3510_s5 + $0x28] sm:$0xff] %v2544_v16 }
 0x28b   :  { %v2475_v27 = vpop.f32.mrf.mxu0 }
 0x28c   :  { %v2516_v29 = vpop.f32.mrf.mxu1  ;;  %v2476_v30 = vadd.f32 %v2475_v27, %v886_v39 }
 0x28d   :  { %v2477_v45 = vpop.f32.mrf.mxu0  ;;  %v2517_v0 = vadd.f32 %v2516_v29, %v894_v28 }
 0x28e   :  { %v2478_v19 = vadd.f32 %v2477_v45, %v890_v63  ;;  %v2518_v22 = vpop.f32.mrf.mxu1 }
 0x28f   :  { %v2519_v31 = vadd.f32 %v2518_v22, %v898_v38  ;;  %v2479_v1 = vpop.f32.mrf.mxu0 }
 0x290   :  { %v2545_v2 = vcombine.low %v2476_v30, %v2478_v19  ;;  %v2520_v47 = vpop.f32.mrf.mxu1 }
 0x291   :  { %v2546_v32 = vcombine.low %v2517_v0, %v2519_v31  ;;  %v2480_v3 = vpop.f32.mrf.mxu0 }
 0x292   :  { %2561 = vst [vmem:[%s3510_s5 + $0x30] sm:$0xff] %v2545_v2  ;;  %v2521_v49 = vpop.f32.mrf.mxu1 }
 0x293   :  { %2562 = vst [vmem:[%s3510_s5 + $0x38] sm:$0xff] %v2546_v32 }
 0x294   :  { %2567 = vsyncpa [#allocation3], 1 }
 0x295   :  { %2568 = vsyncpa [#allocation5], 1 }
 0x296   :  { %2569 = vsyncpa [#allocation8], 1 }

</bundles_post_ra>
